<compile_context>
chip_gen: v7x
topology: tpu7x:2x2x1
jax: 0.10.0
libtpu: 0.0.40
codegen_flags: <defaults>
</compile_context>

<pallas_src>
import math
import jax
import jax.numpy as jnp
from jax.experimental import pallas as pl
from jax.experimental.pallas import tpu as pltpu

# ---- small DistilBERT-style config ----
VOCAB = 1000
MAX_POS = 64
D = 128          # hidden dim
H = 4            # attention heads
DH = D // H      # head dim
FFN = 256        # feed-forward dim
N_LAYERS = 2
B = 2            # batch
S = 8            # sequence length
BS = B * S       # flattened tokens
LN_EPS = 1e-12   # DistilBERT layer-norm eps

# rows of the per-layer packed vector table (all 1x128 params in one array)
_R_BO, _R_G1, _R_BE1, _R_B2, _R_G2, _R_BE2 = range(6)
VEC_ROWS = 8     # padded to a full sublane group


def _layernorm(x, gamma, beta):
    mu = jnp.mean(x, axis=-1, keepdims=True)
    var = jnp.mean((x - mu) ** 2, axis=-1, keepdims=True)
    return (x - mu) * jax.lax.rsqrt(var + LN_EPS) * gamma + beta


# ---------------- fused encoder kernel: emb-LN -> layer_0 -> ... -> CLS ----------------
def encoder_kernel(x_ref, bias_ref, embln_ref, wqkv_ref, bqkv_ref, wo_ref,
                   w1_ref, b1_ref, w2_ref, vec_ref, o_ref, x_sc):
    l = pl.program_id(0)
    scale = 1.0 / math.sqrt(DH)

    # step 0: embedding LayerNorm into the resident activation scratch
    @pl.when(l == 0)
    def _():
        x_sc[...] = _layernorm(x_ref[...], embln_ref[0:1, :], embln_ref[1:2, :])

    x = x_sc[...]                        # (B*S, D) f32
    bias = bias_ref[...]                 # (B*S, B*S) f32: 0 valid / -1e9 masked

    vec = vec_ref[0]                     # (VEC_ROWS, D) f32 packed per-layer vectors
    bo = vec[_R_BO:_R_BO + 1]
    g1, be1 = vec[_R_G1:_R_G1 + 1], vec[_R_BE1:_R_BE1 + 1]
    b2, g2, be2 = vec[_R_B2:_R_B2 + 1], vec[_R_G2:_R_G2 + 1], vec[_R_BE2:_R_BE2 + 1]

    xb = x.astype(jnp.bfloat16)

    # fused QKV projection: one (BS,D)x(D,3D) MXU matmul instead of three
    qkv = jnp.dot(xb, wqkv_ref[0], preferred_element_type=jnp.float32) + bqkv_ref[0]
    q, k, v = qkv[:, 0:D], qkv[:, D:2 * D], qkv[:, 2 * D:3 * D]

    # multi-head attention over the full flattened token axis; cross-batch and
    # padded keys are removed by the additive bias.  Per-head context is folded
    # straight into the output projection (no lane-axis concatenate).
    wo = wo_ref[0]                       # (D, D) bf16
    attn = jnp.zeros_like(x)
    for h in range(H):
        sl = slice(h * DH, (h + 1) * DH)
        qh = q[:, sl].astype(jnp.bfloat16)
        kh = k[:, sl].astype(jnp.bfloat16)
        vh = v[:, sl].astype(jnp.bfloat16)
        s = jax.lax.dot_general(qh, kh, (((1,), (1,)), ((), ())),
                                preferred_element_type=jnp.float32)   # (BS, BS)
        s = s * scale + bias
        s = s - jnp.max(s, axis=-1, keepdims=True)
        p = jnp.exp(s)
        p = p * pl.reciprocal(jnp.sum(p, axis=-1, keepdims=True), approx=True)
        ctx = jnp.dot(p.astype(jnp.bfloat16), vh,
                      preferred_element_type=jnp.float32)             # (BS, DH)
        attn = attn + jnp.dot(ctx.astype(jnp.bfloat16), wo[sl, :],
                              preferred_element_type=jnp.float32)     # (BS, D)
    attn = attn + bo
    h1 = _layernorm(attn + x, g1, be1)                # sa_layer_norm

    f = jnp.dot(h1.astype(jnp.bfloat16), w1_ref[0],
                preferred_element_type=jnp.float32) + b1_ref[0]
    # TODO(synk): DistilBERT uses exact erf-GELU; tanh approximation used here.
    f = jax.nn.gelu(f, approximate=True)
    f = jnp.dot(f.astype(jnp.bfloat16), w2_ref[0],
                preferred_element_type=jnp.float32) + b2
    out = _layernorm(f + h1, g2, be2)                 # output_layer_norm

    x_sc[...] = out

    # write only the CLS rows (row b*S of each batch), only on the last layer;
    # the (B, D) output block is VMEM-resident across the whole layer axis.
    @pl.when(l == N_LAYERS - 1)
    def _():
        for b in range(B):
            o_ref[b:b + 1, :] = out[b * S:b * S + 1, :]


def encode(x_emb_flat, bias, params):
    return pl.pallas_call(
        encoder_kernel,
        out_shape=jax.ShapeDtypeStruct((B, D), jnp.float32),
        grid=(N_LAYERS,),
        in_specs=[
            pl.BlockSpec((BS, D), lambda l: (0, 0)),             # embeddings (pre-LN)
            pl.BlockSpec((BS, BS), lambda l: (0, 0)),            # attention bias
            pl.BlockSpec((8, D), lambda l: (0, 0)),              # emb LN gamma/beta
            pl.BlockSpec((1, D, 3 * D), lambda l: (l, 0, 0)),    # fused Wqkv
            pl.BlockSpec((1, 1, 3 * D), lambda l: (l, 0, 0)),    # fused bqkv
            pl.BlockSpec((1, D, D), lambda l: (l, 0, 0)),        # Wo
            pl.BlockSpec((1, D, FFN), lambda l: (l, 0, 0)),      # W1
            pl.BlockSpec((1, 1, FFN), lambda l: (l, 0, 0)),      # b1
            pl.BlockSpec((1, FFN, D), lambda l: (l, 0, 0)),      # W2
            pl.BlockSpec((1, VEC_ROWS, D), lambda l: (l, 0, 0)), # packed 1x128 params
        ],
        out_specs=pl.BlockSpec((B, D), lambda l: (0, 0)),
        scratch_shapes=[pltpu.VMEM((BS, D), jnp.float32)],
        compiler_params=pltpu.CompilerParams(dimension_semantics=("arbitrary",)),
    )(x_emb_flat, bias, params['emb_ln'], params['w_qkv'], params['b_qkv'],
      params['w_o'], params['w1'], params['b1'], params['w2'], params['vec'])


# ---------------- parameter init (deterministic, synthetic) ----------------
def init_params(key):
    keys = jax.random.split(key, 3 + N_LAYERS)
    std = 0.02

    word_emb = jax.random.normal(keys[0], (VOCAB, D), jnp.float32) * std
    pos_emb = jax.random.normal(keys[1], (MAX_POS, D), jnp.float32) * std
    emb_ln = jnp.zeros((8, D), jnp.float32).at[0].set(1.0)   # row0 gamma, row1 beta

    wqkvs, wos, w1s, w2s, bqkvs, b1s, vecs = [], [], [], [], [], [], []
    for li in range(N_LAYERS):
        lk = jax.random.split(keys[3 + li], 6)
        wq = jax.random.normal(lk[0], (D, D), jnp.float32) * std
        wk = jax.random.normal(lk[1], (D, D), jnp.float32) * std
        wv = jax.random.normal(lk[2], (D, D), jnp.float32) * std
        wo = jax.random.normal(lk[3], (D, D), jnp.float32) * std
        w1 = jax.random.normal(lk[4], (D, FFN), jnp.float32) * std
        w2 = jax.random.normal(lk[5], (FFN, D), jnp.float32) * std
        wqkvs.append(jnp.concatenate([wq, wk, wv], axis=1))   # (D, 3D)
        wos.append(wo)
        w1s.append(w1)
        w2s.append(w2)
        bqkvs.append(jnp.zeros((1, 3 * D), jnp.float32))
        b1s.append(jnp.zeros((1, FFN), jnp.float32))
        vec = jnp.zeros((VEC_ROWS, D), jnp.float32)
        vec = vec.at[_R_G1].set(1.0).at[_R_G2].set(1.0)       # LN gammas = 1
        vecs.append(vec)

    return {
        'word_emb': word_emb,
        'pos_emb': pos_emb,
        'emb_ln': emb_ln,
        'w_qkv': jnp.stack(wqkvs).astype(jnp.bfloat16),       # (L, D, 3D)
        'b_qkv': jnp.stack(bqkvs),                            # (L, 1, 3D) f32
        'w_o': jnp.stack(wos).astype(jnp.bfloat16),           # (L, D, D)
        'w1': jnp.stack(w1s).astype(jnp.bfloat16),            # (L, D, FFN)
        'b1': jnp.stack(b1s),                                 # (L, 1, FFN) f32
        'w2': jnp.stack(w2s).astype(jnp.bfloat16),            # (L, FFN, D)
        'vec': jnp.stack(vecs),                               # (L, VEC_ROWS, D) f32
    }


# ---------------- forward (mirrors TextEncoder.forward after tokenization) ----------------
def text_encoder_forward(input_ids, attention_mask, params):
    # TODO(synk): HF string tokenization has no Pallas equivalent; inputs are token ids.
    Bb, Ss = input_ids.shape
    n = Bb * Ss
    # embeddings (gather is plain-JAX glue), flattened to (B*S, D)
    x = params['word_emb'][input_ids] + params['pos_emb'][jnp.arange(Ss)][None]
    x = x.reshape(n, D).astype(jnp.float32)

    # additive attention bias over flattened tokens:
    #   0 where query/key are in the same batch AND the key is not padding, else -1e9
    key_valid = attention_mask.astype(jnp.float32).reshape(n) > 0.5
    tok = jnp.arange(n)
    same_batch = (tok[:, None] // Ss) == (tok[None, :] // Ss)
    bias = jnp.where(same_batch & key_valid[None, :], 0.0, -1e9).astype(jnp.float32)

    # fused kernel returns cls_emb = last_hidden_state[:, 0, :] directly
    return encode(x, bias, params)


if __name__ == "__main__":
    key = jax.random.PRNGKey(0)
    k_params, k_ids = jax.random.split(key)
    params = init_params(k_params)

    # synthetic "tokenized" batch (stand-in for tokenizer output)
    input_ids = jax.random.randint(k_ids, (B, S), 0, VOCAB, dtype=jnp.int32)
    input_ids = input_ids.at[:, 0].set(101)                              # CLS-like token
    attention_mask = jnp.ones((B, S), jnp.float32).at[1, 6:].set(0.0)    # pad tail of row 1

    forward = jax.jit(text_encoder_forward)
    cls_emb = forward(input_ids, attention_mask, params)
    cls_emb = jax.block_until_ready(cls_emb)
    assert cls_emb.shape == (B, D) and cls_emb.dtype == jnp.float32
    assert bool(jnp.all(jnp.isfinite(cls_emb)))
    print("KERNEL_OK")
</pallas_src>

<mosaic_0001>
module attributes {stable_mosaic.version = 11 : i64} {
  func.func @encoder_kernel(%arg0: i32, %arg1: memref<16x128xf32, #tpu.memory_space<vmem>>, %arg2: memref<16x16xf32, #tpu.memory_space<vmem>>, %arg3: memref<8x128xf32, #tpu.memory_space<vmem>>, %arg4: memref<1x128x384xbf16, #tpu.memory_space<vmem>>, %arg5: memref<1x1x384xf32, #tpu.memory_space<vmem>>, %arg6: memref<1x128x128xbf16, #tpu.memory_space<vmem>>, %arg7: memref<1x128x256xbf16, #tpu.memory_space<vmem>>, %arg8: memref<1x1x256xf32, #tpu.memory_space<vmem>>, %arg9: memref<1x256x128xbf16, #tpu.memory_space<vmem>>, %arg10: memref<1x8x128xf32, #tpu.memory_space<vmem>>, %arg11: memref<2x128xf32, #tpu.memory_space<vmem>>, %arg12: memref<16x128xf32, #tpu.memory_space<vmem>>) attributes {dimension_semantics = [#tpu.dimension_semantics<arbitrary>], iteration_bounds = array<i64: 2>, scalar_prefetch = 0 : i64, scratch_operands = 1 : i64, tpu.core_type = #tpu.core_type<tc>, window_params = [{pipeline_mode = #tpu.pipeline_mode<synchronous>, transform_indices = @transform_0, window_bounds = array<i64: 16, 128>}, {pipeline_mode = #tpu.pipeline_mode<synchronous>, transform_indices = @transform_1, window_bounds = array<i64: 16, 16>}, {pipeline_mode = #tpu.pipeline_mode<synchronous>, transform_indices = @transform_2, window_bounds = array<i64: 8, 128>}, {transform_indices = @transform_3, window_bounds = array<i64: 1, 128, 384>}, {transform_indices = @transform_4, window_bounds = array<i64: 1, 1, 384>}, {transform_indices = @transform_5, window_bounds = array<i64: 1, 128, 128>}, {transform_indices = @transform_6, window_bounds = array<i64: 1, 128, 256>}, {transform_indices = @transform_7, window_bounds = array<i64: 1, 1, 256>}, {transform_indices = @transform_8, window_bounds = array<i64: 1, 256, 128>}, {transform_indices = @transform_9, window_bounds = array<i64: 1, 8, 128>}, {pipeline_mode = #tpu.pipeline_mode<synchronous>, transform_indices = @transform_10, window_bounds = array<i64: 2, 128>}]} {
    %c0_i32 = arith.constant 0 : i32
    %0 = arith.cmpi eq, %arg0, %c0_i32 : i32
    %1 = arith.extui %0 : i1 to i32
    %c0_i32_0 = arith.constant 0 : i32
    %2 = arith.cmpi ne, %1, %c0_i32_0 : i32
    scf.if %2 {
      %c0_69 = arith.constant 0 : index
      %c0_70 = arith.constant 0 : index
      %210 = vector.load %arg1[%c0_69, %c0_70] : memref<16x128xf32, #tpu.memory_space<vmem>>, vector<16x128xf32>
      %c0_71 = arith.constant 0 : index
      %c0_72 = arith.constant 0 : index
      %211 = vector.load %arg3[%c0_71, %c0_72] : memref<8x128xf32, #tpu.memory_space<vmem>>, vector<1x128xf32>
      %c1 = arith.constant 1 : index
      %c0_73 = arith.constant 0 : index
      %212 = vector.load %arg3[%c1, %c0_73] : memref<8x128xf32, #tpu.memory_space<vmem>>, vector<1x128xf32>
      %cst_74 = arith.constant dense<0.000000e+00> : vector<16xf32>
      %213 = vector.multi_reduction <add>, %210, %cst_74 [1] : vector<16x128xf32> to vector<16xf32>
      %214 = vector.shape_cast %213 : vector<16xf32> to vector<16x1xf32>
      %cst_75 = arith.constant 1.280000e+02 : f32
      %215 = vector.broadcast %cst_75 : f32 to vector<16x1xf32>
      %216 = arith.divf %214, %215 : vector<16x1xf32>
      %217 = vector.broadcast %216 : vector<16x1xf32> to vector<16x128xf32>
      %218 = arith.subf %210, %217 : vector<16x128xf32>
      %219 = arith.mulf %218, %218 : vector<16x128xf32>
      %cst_76 = arith.constant dense<0.000000e+00> : vector<16xf32>
      %220 = vector.multi_reduction <add>, %219, %cst_76 [1] : vector<16x128xf32> to vector<16xf32>
      %221 = vector.shape_cast %220 : vector<16xf32> to vector<16x1xf32>
      %cst_77 = arith.constant 1.280000e+02 : f32
      %222 = vector.broadcast %cst_77 : f32 to vector<16x1xf32>
      %223 = arith.divf %221, %222 : vector<16x1xf32>
      %224 = vector.broadcast %216 : vector<16x1xf32> to vector<16x128xf32>
      %225 = arith.subf %210, %224 : vector<16x128xf32>
      %cst_78 = arith.constant 9.99999996E-13 : f32
      %226 = vector.broadcast %cst_78 : f32 to vector<16x1xf32>
      %227 = arith.addf %223, %226 : vector<16x1xf32>
      %228 = math.rsqrt %227 : vector<16x1xf32>
      %229 = vector.broadcast %228 : vector<16x1xf32> to vector<16x128xf32>
      %230 = arith.mulf %225, %229 : vector<16x128xf32>
      %231 = vector.broadcast %211 : vector<1x128xf32> to vector<16x128xf32>
      %232 = arith.mulf %230, %231 : vector<16x128xf32>
      %233 = vector.broadcast %212 : vector<1x128xf32> to vector<16x128xf32>
      %234 = arith.addf %232, %233 : vector<16x128xf32>
      %c0_79 = arith.constant 0 : index
      %c0_80 = arith.constant 0 : index
      %235 = vector.load %arg12[%c0_79, %c0_80] : memref<16x128xf32, #tpu.memory_space<vmem>>, vector<16x128xf32>
      tpu.vector_store %arg12[%c0_79, %c0_80], %234 {strides = array<i32>} : memref<16x128xf32, #tpu.memory_space<vmem>>, vector<16x128xf32>,
    } else {
    }
    %c0 = arith.constant 0 : index
    %c0_1 = arith.constant 0 : index
    %3 = vector.load %arg12[%c0, %c0_1] : memref<16x128xf32, #tpu.memory_space<vmem>>, vector<16x128xf32>
    %c0_2 = arith.constant 0 : index
    %c0_3 = arith.constant 0 : index
    %4 = vector.load %arg2[%c0_2, %c0_3] : memref<16x16xf32, #tpu.memory_space<vmem>>, vector<16x16xf32>
    %c0_4 = arith.constant 0 : index
    %c0_5 = arith.constant 0 : index
    %c0_6 = arith.constant 0 : index
    %5 = vector.load %arg10[%c0_4, %c0_5, %c0_6] : memref<1x8x128xf32, #tpu.memory_space<vmem>>, vector<1x8x128xf32>
    %6 = vector.shape_cast %5 : vector<1x8x128xf32> to vector<8x128xf32>
    %7 = vector.extract_strided_slice %6 {offsets = [0, 0], sizes = [1, 128], strides = [1, 1]} : vector<8x128xf32> to vector<1x128xf32>
    %8 = vector.extract_strided_slice %6 {offsets = [1, 0], sizes = [1, 128], strides = [1, 1]} : vector<8x128xf32> to vector<1x128xf32>
    %9 = vector.extract_strided_slice %6 {offsets = [2, 0], sizes = [1, 128], strides = [1, 1]} : vector<8x128xf32> to vector<1x128xf32>
    %10 = vector.extract_strided_slice %6 {offsets = [3, 0], sizes = [1, 128], strides = [1, 1]} : vector<8x128xf32> to vector<1x128xf32>
    %11 = vector.extract_strided_slice %6 {offsets = [4, 0], sizes = [1, 128], strides = [1, 1]} : vector<8x128xf32> to vector<1x128xf32>
    %12 = vector.extract_strided_slice %6 {offsets = [5, 0], sizes = [1, 128], strides = [1, 1]} : vector<8x128xf32> to vector<1x128xf32>
    %13 = arith.truncf %3 : vector<16x128xf32> to vector<16x128xbf16>
    %c0_7 = arith.constant 0 : index
    %c0_8 = arith.constant 0 : index
    %c0_9 = arith.constant 0 : index
    %14 = vector.load %arg4[%c0_7, %c0_8, %c0_9] : memref<1x128x384xbf16, #tpu.memory_space<vmem>>, vector<1x128x384xbf16>
    %15 = vector.shape_cast %14 : vector<1x128x384xbf16> to vector<128x384xbf16>
    %cst = arith.constant dense<0.000000e+00> : vector<16x384xf32>
    %16 = tpu.matmul %13, %15, %cst {dimension_numbers = #tpu.dot_dimension_numbers<[1], [0], [0], [1], [0, 0, 1, 1], [], []>} : vector<16x128xbf16>, vector<128x384xbf16>, vector<16x384xf32> -> vector<16x384xf32>
    %c0_10 = arith.constant 0 : index
    %c0_11 = arith.constant 0 : index
    %c0_12 = arith.constant 0 : index
    %17 = vector.load %arg5[%c0_10, %c0_11, %c0_12] : memref<1x1x384xf32, #tpu.memory_space<vmem>>, vector<1x1x384xf32>
    %18 = vector.shape_cast %17 : vector<1x1x384xf32> to vector<1x384xf32>
    %19 = vector.broadcast %18 : vector<1x384xf32> to vector<16x384xf32>
    %20 = arith.addf %16, %19 : vector<16x384xf32>
    %21 = vector.extract_strided_slice %20 {offsets = [0, 0], sizes = [16, 128], strides = [1, 1]} : vector<16x384xf32> to vector<16x128xf32>
    %22 = vector.extract_strided_slice %20 {offsets = [0, 128], sizes = [16, 128], strides = [1, 1]} : vector<16x384xf32> to vector<16x128xf32>
    %23 = vector.extract_strided_slice %20 {offsets = [0, 256], sizes = [16, 128], strides = [1, 1]} : vector<16x384xf32> to vector<16x128xf32>
    %c0_13 = arith.constant 0 : index
    %c0_14 = arith.constant 0 : index
    %c0_15 = arith.constant 0 : index
    %24 = vector.load %arg6[%c0_13, %c0_14, %c0_15] : memref<1x128x128xbf16, #tpu.memory_space<vmem>>, vector<1x128x128xbf16>
    %25 = vector.shape_cast %24 : vector<1x128x128xbf16> to vector<128x128xbf16>
    %cst_16 = arith.constant 0.000000e+00 : f32
    %26 = vector.broadcast %cst_16 : f32 to vector<16x128xf32>
    %27 = vector.extract_strided_slice %21 {offsets = [0, 0], sizes = [16, 32], strides = [1, 1]} : vector<16x128xf32> to vector<16x32xf32>
    %28 = arith.truncf %27 : vector<16x32xf32> to vector<16x32xbf16>
    %29 = vector.extract_strided_slice %22 {offsets = [0, 0], sizes = [16, 32], strides = [1, 1]} : vector<16x128xf32> to vector<16x32xf32>
    %30 = arith.truncf %29 : vector<16x32xf32> to vector<16x32xbf16>
    %31 = vector.extract_strided_slice %23 {offsets = [0, 0], sizes = [16, 32], strides = [1, 1]} : vector<16x128xf32> to vector<16x32xf32>
    %32 = arith.truncf %31 : vector<16x32xf32> to vector<16x32xbf16>
    %cst_17 = arith.constant dense<0.000000e+00> : vector<16x16xf32>
    %33 = tpu.matmul %28, %30, %cst_17 {dimension_numbers = #tpu.dot_dimension_numbers<[1], [1], [0], [0], [0, 0, 1, 0], [], []>} : vector<16x32xbf16>, vector<16x32xbf16>, vector<16x16xf32> -> vector<16x16xf32>
    %cst_18 = arith.constant 0.176776692 : f32
    %34 = vector.broadcast %cst_18 : f32 to vector<16x16xf32>
    %35 = arith.mulf %33, %34 : vector<16x16xf32>
    %36 = arith.addf %35, %4 : vector<16x16xf32>
    %cst_19 = arith.constant dense<0xFF800000> : vector<16xf32>
    %37 = vector.multi_reduction <maximumf>, %36, %cst_19 [1] : vector<16x16xf32> to vector<16xf32>
    %38 = vector.shape_cast %37 : vector<16xf32> to vector<16x1xf32>
    %39 = vector.broadcast %38 : vector<16x1xf32> to vector<16x16xf32>
    %40 = arith.subf %36, %39 : vector<16x16xf32>
    %41 = math.exp %40 : vector<16x16xf32>
    %cst_20 = arith.constant dense<0.000000e+00> : vector<16xf32>
    %42 = vector.multi_reduction <add>, %41, %cst_20 [1] : vector<16x16xf32> to vector<16xf32>
    %43 = vector.shape_cast %42 : vector<16xf32> to vector<16x1xf32>
    %44 = tpu.reciprocal %43 {approx = true} : vector<16x1xf32> -> vector<16x1xf32>
    %45 = vector.broadcast %44 : vector<16x1xf32> to vector<16x16xf32>
    %46 = arith.mulf %41, %45 : vector<16x16xf32>
    %47 = arith.truncf %46 : vector<16x16xf32> to vector<16x16xbf16>
    %cst_21 = arith.constant dense<0.000000e+00> : vector<16x32xf32>
    %48 = tpu.matmul %47, %32, %cst_21 {dimension_numbers = #tpu.dot_dimension_numbers<[1], [0], [0], [1], [0, 0, 1, 1], [], []>} : vector<16x16xbf16>, vector<16x32xbf16>, vector<16x32xf32> -> vector<16x32xf32>
    %49 = arith.truncf %48 : vector<16x32xf32> to vector<16x32xbf16>
    %50 = vector.extract_strided_slice %25 {offsets = [0, 0], sizes = [32, 128], strides = [1, 1]} : vector<128x128xbf16> to vector<32x128xbf16>
    %cst_22 = arith.constant dense<0.000000e+00> : vector<16x128xf32>
    %51 = tpu.matmul %49, %50, %cst_22 {dimension_numbers = #tpu.dot_dimension_numbers<[1], [0], [0], [1], [0, 0, 1, 1], [], []>} : vector<16x32xbf16>, vector<32x128xbf16>, vector<16x128xf32> -> vector<16x128xf32>
    %52 = arith.addf %26, %51 : vector<16x128xf32>
    %53 = vector.extract_strided_slice %21 {offsets = [0, 32], sizes = [16, 32], strides = [1, 1]} : vector<16x128xf32> to vector<16x32xf32>
    %54 = arith.truncf %53 : vector<16x32xf32> to vector<16x32xbf16>
    %55 = vector.extract_strided_slice %22 {offsets = [0, 32], sizes = [16, 32], strides = [1, 1]} : vector<16x128xf32> to vector<16x32xf32>
    %56 = arith.truncf %55 : vector<16x32xf32> to vector<16x32xbf16>
    %57 = vector.extract_strided_slice %23 {offsets = [0, 32], sizes = [16, 32], strides = [1, 1]} : vector<16x128xf32> to vector<16x32xf32>
    %58 = arith.truncf %57 : vector<16x32xf32> to vector<16x32xbf16>
    %cst_23 = arith.constant dense<0.000000e+00> : vector<16x16xf32>
    %59 = tpu.matmul %54, %56, %cst_23 {dimension_numbers = #tpu.dot_dimension_numbers<[1], [1], [0], [0], [0, 0, 1, 0], [], []>} : vector<16x32xbf16>, vector<16x32xbf16>, vector<16x16xf32> -> vector<16x16xf32>
    %cst_24 = arith.constant 0.176776692 : f32
    %60 = vector.broadcast %cst_24 : f32 to vector<16x16xf32>
    %61 = arith.mulf %59, %60 : vector<16x16xf32>
    %62 = arith.addf %61, %4 : vector<16x16xf32>
    %cst_25 = arith.constant dense<0xFF800000> : vector<16xf32>
    %63 = vector.multi_reduction <maximumf>, %62, %cst_25 [1] : vector<16x16xf32> to vector<16xf32>
    %64 = vector.shape_cast %63 : vector<16xf32> to vector<16x1xf32>
    %65 = vector.broadcast %64 : vector<16x1xf32> to vector<16x16xf32>
    %66 = arith.subf %62, %65 : vector<16x16xf32>
    %67 = math.exp %66 : vector<16x16xf32>
    %cst_26 = arith.constant dense<0.000000e+00> : vector<16xf32>
    %68 = vector.multi_reduction <add>, %67, %cst_26 [1] : vector<16x16xf32> to vector<16xf32>
    %69 = vector.shape_cast %68 : vector<16xf32> to vector<16x1xf32>
    %70 = tpu.reciprocal %69 {approx = true} : vector<16x1xf32> -> vector<16x1xf32>
    %71 = vector.broadcast %70 : vector<16x1xf32> to vector<16x16xf32>
    %72 = arith.mulf %67, %71 : vector<16x16xf32>
    %73 = arith.truncf %72 : vector<16x16xf32> to vector<16x16xbf16>
    %cst_27 = arith.constant dense<0.000000e+00> : vector<16x32xf32>
    %74 = tpu.matmul %73, %58, %cst_27 {dimension_numbers = #tpu.dot_dimension_numbers<[1], [0], [0], [1], [0, 0, 1, 1], [], []>} : vector<16x16xbf16>, vector<16x32xbf16>, vector<16x32xf32> -> vector<16x32xf32>
    %75 = arith.truncf %74 : vector<16x32xf32> to vector<16x32xbf16>
    %76 = vector.extract_strided_slice %25 {offsets = [32, 0], sizes = [32, 128], strides = [1, 1]} : vector<128x128xbf16> to vector<32x128xbf16>
    %cst_28 = arith.constant dense<0.000000e+00> : vector<16x128xf32>
    %77 = tpu.matmul %75, %76, %cst_28 {dimension_numbers = #tpu.dot_dimension_numbers<[1], [0], [0], [1], [0, 0, 1, 1], [], []>} : vector<16x32xbf16>, vector<32x128xbf16>, vector<16x128xf32> -> vector<16x128xf32>
    %78 = arith.addf %52, %77 : vector<16x128xf32>
    %79 = vector.extract_strided_slice %21 {offsets = [0, 64], sizes = [16, 32], strides = [1, 1]} : vector<16x128xf32> to vector<16x32xf32>
    %80 = arith.truncf %79 : vector<16x32xf32> to vector<16x32xbf16>
    %81 = vector.extract_strided_slice %22 {offsets = [0, 64], sizes = [16, 32], strides = [1, 1]} : vector<16x128xf32> to vector<16x32xf32>
    %82 = arith.truncf %81 : vector<16x32xf32> to vector<16x32xbf16>
    %83 = vector.extract_strided_slice %23 {offsets = [0, 64], sizes = [16, 32], strides = [1, 1]} : vector<16x128xf32> to vector<16x32xf32>
    %84 = arith.truncf %83 : vector<16x32xf32> to vector<16x32xbf16>
    %cst_29 = arith.constant dense<0.000000e+00> : vector<16x16xf32>
    %85 = tpu.matmul %80, %82, %cst_29 {dimension_numbers = #tpu.dot_dimension_numbers<[1], [1], [0], [0], [0, 0, 1, 0], [], []>} : vector<16x32xbf16>, vector<16x32xbf16>, vector<16x16xf32> -> vector<16x16xf32>
    %cst_30 = arith.constant 0.176776692 : f32
    %86 = vector.broadcast %cst_30 : f32 to vector<16x16xf32>
    %87 = arith.mulf %85, %86 : vector<16x16xf32>
    %88 = arith.addf %87, %4 : vector<16x16xf32>
    %cst_31 = arith.constant dense<0xFF800000> : vector<16xf32>
    %89 = vector.multi_reduction <maximumf>, %88, %cst_31 [1] : vector<16x16xf32> to vector<16xf32>
    %90 = vector.shape_cast %89 : vector<16xf32> to vector<16x1xf32>
    %91 = vector.broadcast %90 : vector<16x1xf32> to vector<16x16xf32>
    %92 = arith.subf %88, %91 : vector<16x16xf32>
    %93 = math.exp %92 : vector<16x16xf32>
    %cst_32 = arith.constant dense<0.000000e+00> : vector<16xf32>
    %94 = vector.multi_reduction <add>, %93, %cst_32 [1] : vector<16x16xf32> to vector<16xf32>
    %95 = vector.shape_cast %94 : vector<16xf32> to vector<16x1xf32>
    %96 = tpu.reciprocal %95 {approx = true} : vector<16x1xf32> -> vector<16x1xf32>
    %97 = vector.broadcast %96 : vector<16x1xf32> to vector<16x16xf32>
    %98 = arith.mulf %93, %97 : vector<16x16xf32>
    %99 = arith.truncf %98 : vector<16x16xf32> to vector<16x16xbf16>
    %cst_33 = arith.constant dense<0.000000e+00> : vector<16x32xf32>
    %100 = tpu.matmul %99, %84, %cst_33 {dimension_numbers = #tpu.dot_dimension_numbers<[1], [0], [0], [1], [0, 0, 1, 1], [], []>} : vector<16x16xbf16>, vector<16x32xbf16>, vector<16x32xf32> -> vector<16x32xf32>
    %101 = arith.truncf %100 : vector<16x32xf32> to vector<16x32xbf16>
    %102 = vector.extract_strided_slice %25 {offsets = [64, 0], sizes = [32, 128], strides = [1, 1]} : vector<128x128xbf16> to vector<32x128xbf16>
    %cst_34 = arith.constant dense<0.000000e+00> : vector<16x128xf32>
    %103 = tpu.matmul %101, %102, %cst_34 {dimension_numbers = #tpu.dot_dimension_numbers<[1], [0], [0], [1], [0, 0, 1, 1], [], []>} : vector<16x32xbf16>, vector<32x128xbf16>, vector<16x128xf32> -> vector<16x128xf32>
    %104 = arith.addf %78, %103 : vector<16x128xf32>
    %105 = vector.extract_strided_slice %21 {offsets = [0, 96], sizes = [16, 32], strides = [1, 1]} : vector<16x128xf32> to vector<16x32xf32>
    %106 = arith.truncf %105 : vector<16x32xf32> to vector<16x32xbf16>
    %107 = vector.extract_strided_slice %22 {offsets = [0, 96], sizes = [16, 32], strides = [1, 1]} : vector<16x128xf32> to vector<16x32xf32>
    %108 = arith.truncf %107 : vector<16x32xf32> to vector<16x32xbf16>
    %109 = vector.extract_strided_slice %23 {offsets = [0, 96], sizes = [16, 32], strides = [1, 1]} : vector<16x128xf32> to vector<16x32xf32>
    %110 = arith.truncf %109 : vector<16x32xf32> to vector<16x32xbf16>
    %cst_35 = arith.constant dense<0.000000e+00> : vector<16x16xf32>
    %111 = tpu.matmul %106, %108, %cst_35 {dimension_numbers = #tpu.dot_dimension_numbers<[1], [1], [0], [0], [0, 0, 1, 0], [], []>} : vector<16x32xbf16>, vector<16x32xbf16>, vector<16x16xf32> -> vector<16x16xf32>
    %cst_36 = arith.constant 0.176776692 : f32
    %112 = vector.broadcast %cst_36 : f32 to vector<16x16xf32>
    %113 = arith.mulf %111, %112 : vector<16x16xf32>
    %114 = arith.addf %113, %4 : vector<16x16xf32>
    %cst_37 = arith.constant dense<0xFF800000> : vector<16xf32>
    %115 = vector.multi_reduction <maximumf>, %114, %cst_37 [1] : vector<16x16xf32> to vector<16xf32>
    %116 = vector.shape_cast %115 : vector<16xf32> to vector<16x1xf32>
    %117 = vector.broadcast %116 : vector<16x1xf32> to vector<16x16xf32>
    %118 = arith.subf %114, %117 : vector<16x16xf32>
    %119 = math.exp %118 : vector<16x16xf32>
    %cst_38 = arith.constant dense<0.000000e+00> : vector<16xf32>
    %120 = vector.multi_reduction <add>, %119, %cst_38 [1] : vector<16x16xf32> to vector<16xf32>
    %121 = vector.shape_cast %120 : vector<16xf32> to vector<16x1xf32>
    %122 = tpu.reciprocal %121 {approx = true} : vector<16x1xf32> -> vector<16x1xf32>
    %123 = vector.broadcast %122 : vector<16x1xf32> to vector<16x16xf32>
    %124 = arith.mulf %119, %123 : vector<16x16xf32>
    %125 = arith.truncf %124 : vector<16x16xf32> to vector<16x16xbf16>
    %cst_39 = arith.constant dense<0.000000e+00> : vector<16x32xf32>
    %126 = tpu.matmul %125, %110, %cst_39 {dimension_numbers = #tpu.dot_dimension_numbers<[1], [0], [0], [1], [0, 0, 1, 1], [], []>} : vector<16x16xbf16>, vector<16x32xbf16>, vector<16x32xf32> -> vector<16x32xf32>
    %127 = arith.truncf %126 : vector<16x32xf32> to vector<16x32xbf16>
    %128 = vector.extract_strided_slice %25 {offsets = [96, 0], sizes = [32, 128], strides = [1, 1]} : vector<128x128xbf16> to vector<32x128xbf16>
    %cst_40 = arith.constant dense<0.000000e+00> : vector<16x128xf32>
    %129 = tpu.matmul %127, %128, %cst_40 {dimension_numbers = #tpu.dot_dimension_numbers<[1], [0], [0], [1], [0, 0, 1, 1], [], []>} : vector<16x32xbf16>, vector<32x128xbf16>, vector<16x128xf32> -> vector<16x128xf32>
    %130 = arith.addf %104, %129 : vector<16x128xf32>
    %131 = vector.broadcast %7 : vector<1x128xf32> to vector<16x128xf32>
    %132 = arith.addf %130, %131 : vector<16x128xf32>
    %133 = arith.addf %132, %3 : vector<16x128xf32>
    %cst_41 = arith.constant dense<0.000000e+00> : vector<16xf32>
    %134 = vector.multi_reduction <add>, %133, %cst_41 [1] : vector<16x128xf32> to vector<16xf32>
    %135 = vector.shape_cast %134 : vector<16xf32> to vector<16x1xf32>
    %cst_42 = arith.constant 1.280000e+02 : f32
    %136 = vector.broadcast %cst_42 : f32 to vector<16x1xf32>
    %137 = arith.divf %135, %136 : vector<16x1xf32>
    %138 = vector.broadcast %137 : vector<16x1xf32> to vector<16x128xf32>
    %139 = arith.subf %133, %138 : vector<16x128xf32>
    %140 = arith.mulf %139, %139 : vector<16x128xf32>
    %cst_43 = arith.constant dense<0.000000e+00> : vector<16xf32>
    %141 = vector.multi_reduction <add>, %140, %cst_43 [1] : vector<16x128xf32> to vector<16xf32>
    %142 = vector.shape_cast %141 : vector<16xf32> to vector<16x1xf32>
    %cst_44 = arith.constant 1.280000e+02 : f32
    %143 = vector.broadcast %cst_44 : f32 to vector<16x1xf32>
    %144 = arith.divf %142, %143 : vector<16x1xf32>
    %145 = vector.broadcast %137 : vector<16x1xf32> to vector<16x128xf32>
    %146 = arith.subf %133, %145 : vector<16x128xf32>
    %cst_45 = arith.constant 9.99999996E-13 : f32
    %147 = vector.broadcast %cst_45 : f32 to vector<16x1xf32>
    %148 = arith.addf %144, %147 : vector<16x1xf32>
    %149 = math.rsqrt %148 : vector<16x1xf32>
    %150 = vector.broadcast %149 : vector<16x1xf32> to vector<16x128xf32>
    %151 = arith.mulf %146, %150 : vector<16x128xf32>
    %152 = vector.broadcast %8 : vector<1x128xf32> to vector<16x128xf32>
    %153 = arith.mulf %151, %152 : vector<16x128xf32>
    %154 = vector.broadcast %9 : vector<1x128xf32> to vector<16x128xf32>
    %155 = arith.addf %153, %154 : vector<16x128xf32>
    %156 = arith.truncf %155 : vector<16x128xf32> to vector<16x128xbf16>
    %c0_46 = arith.constant 0 : index
    %c0_47 = arith.constant 0 : index
    %c0_48 = arith.constant 0 : index
    %157 = vector.load %arg7[%c0_46, %c0_47, %c0_48] : memref<1x128x256xbf16, #tpu.memory_space<vmem>>, vector<1x128x256xbf16>
    %158 = vector.shape_cast %157 : vector<1x128x256xbf16> to vector<128x256xbf16>
    %cst_49 = arith.constant dense<0.000000e+00> : vector<16x256xf32>
    %159 = tpu.matmul %156, %158, %cst_49 {dimension_numbers = #tpu.dot_dimension_numbers<[1], [0], [0], [1], [0, 0, 1, 1], [], []>} : vector<16x128xbf16>, vector<128x256xbf16>, vector<16x256xf32> -> vector<16x256xf32>
    %c0_50 = arith.constant 0 : index
    %c0_51 = arith.constant 0 : index
    %c0_52 = arith.constant 0 : index
    %160 = vector.load %arg8[%c0_50, %c0_51, %c0_52] : memref<1x1x256xf32, #tpu.memory_space<vmem>>, vector<1x1x256xf32>
    %161 = vector.shape_cast %160 : vector<1x1x256xf32> to vector<1x256xf32>
    %162 = vector.broadcast %161 : vector<1x256xf32> to vector<16x256xf32>
    %163 = arith.addf %159, %162 : vector<16x256xf32>
    %164 = arith.mulf %163, %163 : vector<16x256xf32>
    %165 = arith.mulf %163, %164 : vector<16x256xf32>
    %cst_53 = arith.constant 4.471500e-02 : f32
    %166 = vector.broadcast %cst_53 : f32 to vector<16x256xf32>
    %167 = arith.mulf %166, %165 : vector<16x256xf32>
    %168 = arith.addf %163, %167 : vector<16x256xf32>
    %cst_54 = arith.constant 0.797884583 : f32
    %169 = vector.broadcast %cst_54 : f32 to vector<16x256xf32>
    %170 = arith.mulf %169, %168 : vector<16x256xf32>
    %171 = math.tanh %170 : vector<16x256xf32>
    %cst_55 = arith.constant 1.000000e+00 : f32
    %172 = vector.broadcast %cst_55 : f32 to vector<16x256xf32>
    %173 = arith.addf %172, %171 : vector<16x256xf32>
    %cst_56 = arith.constant 5.000000e-01 : f32
    %174 = vector.broadcast %cst_56 : f32 to vector<16x256xf32>
    %175 = arith.mulf %174, %173 : vector<16x256xf32>
    %176 = arith.mulf %163, %175 : vector<16x256xf32>
    %177 = arith.truncf %176 : vector<16x256xf32> to vector<16x256xbf16>
    %c0_57 = arith.constant 0 : index
    %c0_58 = arith.constant 0 : index
    %c0_59 = arith.constant 0 : index
    %178 = vector.load %arg9[%c0_57, %c0_58, %c0_59] : memref<1x256x128xbf16, #tpu.memory_space<vmem>>, vector<1x256x128xbf16>
    %179 = vector.shape_cast %178 : vector<1x256x128xbf16> to vector<256x128xbf16>
    %cst_60 = arith.constant dense<0.000000e+00> : vector<16x128xf32>
    %180 = tpu.matmul %177, %179, %cst_60 {dimension_numbers = #tpu.dot_dimension_numbers<[1], [0], [0], [1], [0, 0, 1, 1], [], []>} : vector<16x256xbf16>, vector<256x128xbf16>, vector<16x128xf32> -> vector<16x128xf32>
    %181 = vector.broadcast %10 : vector<1x128xf32> to vector<16x128xf32>
    %182 = arith.addf %180, %181 : vector<16x128xf32>
    %183 = arith.addf %182, %155 : vector<16x128xf32>
    %cst_61 = arith.constant dense<0.000000e+00> : vector<16xf32>
    %184 = vector.multi_reduction <add>, %183, %cst_61 [1] : vector<16x128xf32> to vector<16xf32>
    %185 = vector.shape_cast %184 : vector<16xf32> to vector<16x1xf32>
    %cst_62 = arith.constant 1.280000e+02 : f32
    %186 = vector.broadcast %cst_62 : f32 to vector<16x1xf32>
    %187 = arith.divf %185, %186 : vector<16x1xf32>
    %188 = vector.broadcast %187 : vector<16x1xf32> to vector<16x128xf32>
    %189 = arith.subf %183, %188 : vector<16x128xf32>
    %190 = arith.mulf %189, %189 : vector<16x128xf32>
    %cst_63 = arith.constant dense<0.000000e+00> : vector<16xf32>
    %191 = vector.multi_reduction <add>, %190, %cst_63 [1] : vector<16x128xf32> to vector<16xf32>
    %192 = vector.shape_cast %191 : vector<16xf32> to vector<16x1xf32>
    %cst_64 = arith.constant 1.280000e+02 : f32
    %193 = vector.broadcast %cst_64 : f32 to vector<16x1xf32>
    %194 = arith.divf %192, %193 : vector<16x1xf32>
    %195 = vector.broadcast %187 : vector<16x1xf32> to vector<16x128xf32>
    %196 = arith.subf %183, %195 : vector<16x128xf32>
    %cst_65 = arith.constant 9.99999996E-13 : f32
    %197 = vector.broadcast %cst_65 : f32 to vector<16x1xf32>
    %198 = arith.addf %194, %197 : vector<16x1xf32>
    %199 = math.rsqrt %198 : vector<16x1xf32>
    %200 = vector.broadcast %199 : vector<16x1xf32> to vector<16x128xf32>
    %201 = arith.mulf %196, %200 : vector<16x128xf32>
    %202 = vector.broadcast %11 : vector<1x128xf32> to vector<16x128xf32>
    %203 = arith.mulf %201, %202 : vector<16x128xf32>
    %204 = vector.broadcast %12 : vector<1x128xf32> to vector<16x128xf32>
    %205 = arith.addf %203, %204 : vector<16x128xf32>
    %c0_66 = arith.constant 0 : index
    %c0_67 = arith.constant 0 : index
    %206 = vector.load %arg12[%c0_66, %c0_67] : memref<16x128xf32, #tpu.memory_space<vmem>>, vector<16x128xf32>
    tpu.vector_store %arg12[%c0_66, %c0_67], %205 {strides = array<i32>} : memref<16x128xf32, #tpu.memory_space<vmem>>, vector<16x128xf32>,
    %c1_i32 = arith.constant 1 : i32
    %207 = arith.cmpi eq, %arg0, %c1_i32 : i32
    %208 = arith.extui %207 : i1 to i32
    %c0_i32_68 = arith.constant 0 : i32
    %209 = arith.cmpi ne, %208, %c0_i32_68 : i32
    scf.if %209 {
      %210 = vector.extract_strided_slice %205 {offsets = [0, 0], sizes = [1, 128], strides = [1, 1]} : vector<16x128xf32> to vector<1x128xf32>
      %c0_69 = arith.constant 0 : index
      %c0_70 = arith.constant 0 : index
      %211 = vector.load %arg11[%c0_69, %c0_70] : memref<2x128xf32, #tpu.memory_space<vmem>>, vector<1x128xf32>
      tpu.vector_store %arg11[%c0_69, %c0_70], %210 {strides = array<i32>} : memref<2x128xf32, #tpu.memory_space<vmem>>, vector<1x128xf32>,
      %212 = vector.extract_strided_slice %205 {offsets = [8, 0], sizes = [1, 128], strides = [1, 1]} : vector<16x128xf32> to vector<1x128xf32>
      %c1 = arith.constant 1 : index
      %c0_71 = arith.constant 0 : index
      %213 = vector.load %arg11[%c1, %c0_71] : memref<2x128xf32, #tpu.memory_space<vmem>>, vector<1x128xf32>
      tpu.vector_store %arg11[%c1, %c0_71], %212 {strides = array<i32>} : memref<2x128xf32, #tpu.memory_space<vmem>>, vector<1x128xf32>,
    } else {
    }
    return
  }
  func.func @transform_0(%arg0: i32) -> (i32, i32) {
    %c0_i32 = arith.constant 0 : i32
    %c0_i32_0 = arith.constant 0 : i32
    %c0_i32_1 = arith.constant 0 : i32
    return %c0_i32, %c0_i32_0 : i32, i32
  }
  func.func @transform_1(%arg0: i32) -> (i32, i32) {
    %c0_i32 = arith.constant 0 : i32
    %c0_i32_0 = arith.constant 0 : i32
    %c0_i32_1 = arith.constant 0 : i32
    return %c0_i32, %c0_i32_0 : i32, i32
  }
  func.func @transform_2(%arg0: i32) -> (i32, i32) {
    %c0_i32 = arith.constant 0 : i32
    %c0_i32_0 = arith.constant 0 : i32
    %c0_i32_1 = arith.constant 0 : i32
    return %c0_i32, %c0_i32_0 : i32, i32
  }
  func.func @transform_3(%arg0: i32) -> (i32, i32, i32) {
    %c0_i32 = arith.constant 0 : i32
    %c0_i32_0 = arith.constant 0 : i32
    %c0_i32_1 = arith.constant 0 : i32
    return %arg0, %c0_i32, %c0_i32_0 : i32, i32, i32
  }
  func.func @transform_4(%arg0: i32) -> (i32, i32, i32) {
    %c0_i32 = arith.constant 0 : i32
    %c0_i32_0 = arith.constant 0 : i32
    %c0_i32_1 = arith.constant 0 : i32
    return %arg0, %c0_i32, %c0_i32_0 : i32, i32, i32
  }
  func.func @transform_5(%arg0: i32) -> (i32, i32, i32) {
    %c0_i32 = arith.constant 0 : i32
    %c0_i32_0 = arith.constant 0 : i32
    %c0_i32_1 = arith.constant 0 : i32
    return %arg0, %c0_i32, %c0_i32_0 : i32, i32, i32
  }
  func.func @transform_6(%arg0: i32) -> (i32, i32, i32) {
    %c0_i32 = arith.constant 0 : i32
    %c0_i32_0 = arith.constant 0 : i32
    %c0_i32_1 = arith.constant 0 : i32
    return %arg0, %c0_i32, %c0_i32_0 : i32, i32, i32
  }
  func.func @transform_7(%arg0: i32) -> (i32, i32, i32) {
    %c0_i32 = arith.constant 0 : i32
    %c0_i32_0 = arith.constant 0 : i32
    %c0_i32_1 = arith.constant 0 : i32
    return %arg0, %c0_i32, %c0_i32_0 : i32, i32, i32
  }
  func.func @transform_8(%arg0: i32) -> (i32, i32, i32) {
    %c0_i32 = arith.constant 0 : i32
    %c0_i32_0 = arith.constant 0 : i32
    %c0_i32_1 = arith.constant 0 : i32
    return %arg0, %c0_i32, %c0_i32_0 : i32, i32, i32
  }
  func.func @transform_9(%arg0: i32) -> (i32, i32, i32) {
    %c0_i32 = arith.constant 0 : i32
    %c0_i32_0 = arith.constant 0 : i32
    %c0_i32_1 = arith.constant 0 : i32
    return %arg0, %c0_i32, %c0_i32_0 : i32, i32, i32
  }
  func.func @transform_10(%arg0: i32) -> (i32, i32) {
    %c0_i32 = arith.constant 0 : i32
    %c0_i32_0 = arith.constant 0 : i32
    %c0_i32_1 = arith.constant 0 : i32
    return %c0_i32, %c0_i32_0 : i32, i32
  }
}

</mosaic_0001>

<bundles_post_ra>
// kernel: text_encoder_forward.1
= control target key start
LH: loop header
LB: loop body
LE: loop exit
PB: predicated region body
PF: predicated region fallthrough
CT: control target
= control target key end

     0   :  { %s3378_s0 = inlined_call_operand.vmem [shape: f32[16,128], index: 0, kind: input, shape index: {}]   ;;  %s3379_s1 = inlined_call_operand.vmem [shape: f32[16,16], index: 1, kind: input, shape index: {}]   ;;  %s3380_s2 = inlined_call_operand.vmem [shape: f32[8,128], index: 2, kind: input, shape index: {}]   ;;  %s3381_s3 = inlined_call_operand.hbm [shape: bf16[2,128,384], index: 3, kind: input, shape index: {}]   ;;  %s3382_s4 = inlined_call_operand.vmem [shape: f32[2,1,384], index: 4, kind: input, shape index: {}]   ;;  %s3383_s5 = inlined_call_operand.hbm [shape: bf16[2,128,128], index: 5, kind: input, shape index: {}]   ;;  %s3384_s6 = inlined_call_operand.vmem [shape: bf16[2,128,256], index: 6, kind: input, shape index: {}]   ;;  %s3385_s7 = inlined_call_operand.vmem [shape: f32[2,1,256], index: 7, kind: input, shape index: {}]   ;;  %s3386_s8 = inlined_call_operand.hbm [shape: bf16[2,256,128], index: 8, kind: input, shape index: {}]   ;;  %s3387_s9 = inlined_call_operand.vmem [shape: f32[2,8,128], index: 9, kind: input, shape index: {}]   ;;  %s3388_s10 = inlined_call_operand.hbm [shape: f32[2,128], index: 10, kind: output, shape index: {}]  }
   0x1   :  { %3395 = sst [smem:[#allocation16_spill]] %s3381_s3 }
   0x2   :  { %3396 = sst [smem:[#allocation17_spill]] %s3383_s5 }
   0x3   :  { %15 = vsyncpa [#allocation4], 0 }
   0x4   :  { %17 = vsyncpa [#allocation4 + $0x1], 0 }
   0x5   :  { %18 = vsyncpa [#allocation7], 0 }
   0x6   :  { %20 = vsyncpa [#allocation7 + $0x1], 0 }
   0x7   :  { %21 = vsyncpa [#allocation5], 0  ;;  %s2868_s13 = smov 0   ;;  %s2870_s14 = smov 0  }
   0x8   :  { %s2872_s15 = smov 0   ;;  %s2874_s16 = smov 0  }
   0x9 LB: > { %3397 = sst [smem:[#allocation13_spill]] %s2793_s15  ;;  %s2887_s17 = sadd.s32 4294967295, %s2797_s16   ;;  %s2797_s16 = sphi %s2874_s16, %s3410_s16   ;;  %s2793_s15 = sphi %s2872_s15, %s3412_s15   ;;  %s2789_s14 = sphi %s2870_s14, %s3414_s14   ;;  %s2785_s13 = sphi %s2868_s13, %s3413_s13  }
   0xa   : > { %s2890_s18 = sadd.s32 1, %s2797_s16   ;;  %s97_s20 = sadd.s32 1, %s2793_s15 }
   0xb   : > { %3398 = sst [smem:[#allocation14_spill]] %s2890_s18  ;;  %s94_s19 = ssub.s32 %s2797_s16, %s2890_s18 }
   0xc   : > { %p95_p0 = scmp.eq.s32.totalorder %s94_s19, 0  ;;  %p104_p1 = scmp.ne.s32.totalorder %s2793_s15, %s2789_s14 }
   0xd   : > { %p105_p2 = scmp.eq.s32.totalorder %s2797_s16, 0  ;;  %p110_p3 = scmp.ne.s32.totalorder %s2789_s14, %s2785_s13 }
   0xe   : > { %s2900_s21 = scalar_select %p95_p0, %s2793_s15, %s97_s20  }
   0xf   : > { %p106_p4 = por %p105_p2, %p104_p1  ;;  %p111_p5 = scmp.eq.s32.totalorder %s2887_s17, 0 }
  0x10   : > { %3399 = sst [smem:[#allocation15_spill]] %s2900_s21  ;;  %p2461_p6 = scmp.lt.s32.totalorder %s2797_s16, 2 }
  0x11   : > { %p2904_p7 = por %p111_p5, %p110_p3  ;;  %s2909_s23 = sand.u32 1, %s2793_s15  }
  0x12   : > { %p2911_p8 = pnand %p2461_p6, %p106_p4  ;;  %s348_s25 = sand.u32 1, %s2797_s16  }
  0x13   : > { %s3400_s22 = scalar_select %p2904_p7, 1, 0 }
  0x14   : > { %s2178_s26 = sshll.u32 %s2909_s23, 6  ;;  %s2275_s27 = sshll.u32 %s2797_s16, 10 }
  0x15   : > { %s352_s28 = scalar_lea.vmem [#allocation6], %s2178_s26  ;;  %s3402_s5 = sld [smem:[#allocation17_spill]] }
  0x16   : > { %s359_s29 = sshll.u32 %s352_s28, 4  ;;  %s2925_s13 = scalar_lea.sflag [#allocation7], %s348_s25  ;;  %s2923_s29 = int_to_ptr.vmem [resolvable:$true] %s359_s29 }
  0x17   : > { %p2931_p10 = pneg %p2911_p8 }
  0x1b   : > { %s2921_s12 = scalar_lea.hbm %s3402_s5, %s2275_s27  ;;  %s2644_s28 = scalar_lea.hbm %s3402_s5, 2048 }
  0x1c   : > { %s2639_s19 = scalar_lea.hbm %s2921_s12, 1024  ;;  %p2645_p13 = scmp.lt.u32.totalorder %s2921_s12, %s3402_s5 }
  0x1d   : > { %p2640_p9 = scmp.ne.s32.totalorder %s2921_s12, %s2639_s19  ;;  %p2646_p0 = scmp.lt.u32.totalorder %s2644_s28, %s2639_s19 }
  0x1e   : > { %p2648_p2 = scmp.lt.u32.totalorder %s2639_s19, %s2921_s12 }
  0x1f   : > { %p2642_p11 = pnand %p2931_p10, %p2640_p9  ;;  %p2647_p1 = por %p2646_p0, %p2645_p13 }
  0x21   : > { %p2643_p12 = pneg %p2642_p11  ;;  %p2649_p3 = por %p2648_p2, %p2647_p1 }
  0x23   : > { %p2650_p4 = pnand %p2649_p3, %p2643_p12 }
  0x25   : > { %2653 = shalt.err (!%p2650_p4)
}
  0x26   : > { %s2654_s25 = scalar_lea.vmem %s2923_s29, 1024  ;;  %s2799_s26 = smov [#allocation6]  }
  0x27   : > { %p2655_p5 = scmp.ne.s32.totalorder %s2923_s29, %s2654_s25  ;;  %s2659_s27 = sshll.u32 %s2799_s26, 4  ;;  %s2660_s27 = int_to_ptr.vmem [resolvable:$false] %s2659_s27 }
  0x28   : > { %s2661_s30 = scalar_lea.vmem %s2660_s27, 2048  ;;  %p2662_p11 = scmp.lt.s32.totalorder %s2923_s29, %s2660_s27 }
  0x29   : > { %p2657_p6 = pnand %p2655_p5, %p2931_p10  ;;  %p2663_p7 = scmp.lt.s32.totalorder %s2661_s30, %s2654_s25 }
  0x2b   : > { %p2658_p9 = pneg %p2657_p6  ;;  %p2664_p13 = por %p2663_p7, %p2662_p11 }
  0x2d   : > { %p2665_p0 = pnand %p2664_p13, %p2658_p9 }
  0x2f   : > { %2668 = shalt.err (!%p2665_p0)
}
  0x30   : > { %s3391_s19 = smov 64   ;;  %s3392_s28 = smov 4  }
  0x31   : > { %2457 = dma.hbm_to_vmem [thread:$0]  (!%p2911_p8), %s2921_s12, 1024, %s2923_s29, %s2925_s13, %s3391_s19, %s3391_s19, %s3392_s28  }
  0x32   : > { %p2184_p7 = scmp.ge.s32.totalorder %s2797_s16, 1  ;;  %p410_p12 = scmp.lt.s32.totalorder %s2797_s16, 3 }
  0x33   : > { %s2437_s11 = smul.u32 192, %s2909_s23  ;;  %s3405_s3 = sld [smem:[#allocation16_spill]] }
  0x34   : > { %p2961_p1 = pnand %p2184_p7, %p410_p12  ;;  %s2438_s26 = smul.u32 3072, %s2797_s16 }
  0x35   : > { %s324_s21 = scalar_lea.vmem [#allocation3], %s2437_s11  ;;  %s321_s29 = scalar_lea.sflag [#allocation4], %s2909_s23 }
  0x36   : > { %s3404_s25 = scalar_select %p2961_p1, 1, 0 }
  0x37   : > { %s331_s15 = sshll.u32 %s324_s21, 4  ;;  %s2971_s15 = int_to_ptr.vmem [resolvable:$true] %s331_s15 }
  0x39   : > { %s2969_s5 = scalar_lea.hbm %s3405_s3, %s2438_s26  ;;  %s2674_s27 = scalar_lea.hbm %s3405_s3, 6144 }
  0x3a   : > { %s2669_s12 = scalar_lea.hbm %s2969_s5, 3072  ;;  %p2675_p5 = scmp.lt.u32.totalorder %s2969_s5, %s3405_s3 }
  0x3b   : > { %p2670_p2 = scmp.ne.s32.totalorder %s2969_s5, %s2669_s12  ;;  %p2676_p6 = scmp.lt.u32.totalorder %s2674_s27, %s2669_s12 }
  0x3c   : > { %p2678_p11 = scmp.lt.u32.totalorder %s2669_s12, %s2969_s5 }
  0x3d   : > { %p2672_p3 = pnand %p2670_p2, %p2931_p10  ;;  %p2677_p9 = por %p2676_p6, %p2675_p5 }
  0x3f   : > { %p2673_p4 = pneg %p2672_p3  ;;  %p2679_p13 = por %p2678_p11, %p2677_p9 }
  0x41   : > { %p2680_p0 = pnand %p2679_p13, %p2673_p4 }
  0x43   : > { %2683 = shalt.err (!%p2680_p0)
}
  0x44   : > { %s2684_s21 = scalar_lea.vmem %s2971_s15, 3072  ;;  %s2802_s19 = smov [#allocation3]  }
  0x45   : > { %p2685_p7 = scmp.ne.s32.totalorder %s2971_s15, %s2684_s21  ;;  %s2689_s28 = sshll.u32 %s2802_s19, 4  ;;  %s2690_s28 = int_to_ptr.vmem [resolvable:$false] %s2689_s28 }
  0x46   : > { %s2691_s11 = scalar_lea.vmem %s2690_s28, 6144  ;;  %p2692_p3 = scmp.lt.s32.totalorder %s2971_s15, %s2690_s28 }
  0x47   : > { %p2687_p12 = pnand %p2685_p7, %p2931_p10  ;;  %p2693_p1 = scmp.lt.s32.totalorder %s2691_s11, %s2684_s21 }
  0x49   : > { %p2688_p2 = pneg %p2687_p12  ;;  %p2694_p5 = por %p2693_p1, %p2692_p3 }
  0x4b   : > { %p2695_p6 = pnand %p2694_p5, %p2688_p2 }
  0x4d   : > { %2698 = shalt.err (!%p2695_p6)
}
  0x4e   : > { %s2803_s12 = smov 192   ;;  %s2804_s27 = smov 12  }
  0x4f   : > { %2454 = dma.hbm_to_vmem [thread:$0]  (!%p2911_p8), %s2969_s5, 3072, %s2971_s15, %s321_s29, %s2803_s12, %s2803_s12, %s2804_s27  }
  0x50   : > { %s2181_s26 = sshll.u32 %s2909_s23, 7  ;;  %s2276_s30 = sshll.u32 %s2797_s16, 11 }
  0x51   : > { %s3002_s21 = scalar_lea.hbm %s3386_s8, %s2276_s30  ;;  %s388_s11 = scalar_lea.vmem [#allocation8], %s2181_s26 }
  0x52   : > { %s395_s3 = sshll.u32 %s388_s11, 4  ;;  %s2699_s18 = scalar_lea.hbm %s3002_s21, 2048  ;;  %s3004_s3 = int_to_ptr.vmem [resolvable:$true] %s395_s3 }
  0x53   : > { %p2700_p1 = scmp.ne.s32.totalorder %s3002_s21, %s2699_s18  ;;  %s2704_s16 = scalar_lea.hbm %s3386_s8, 4096 }
  0x54   : > { %p2705_p11 = scmp.lt.u32.totalorder %s3002_s21, %s3386_s8  ;;  %p2706_p13 = scmp.lt.u32.totalorder %s2704_s16, %s2699_s18 }
  0x55   : > { %p2702_p4 = pnand %p2700_p1, %p2931_p10  ;;  %p2708_p7 = scmp.lt.u32.totalorder %s2699_s18, %s3002_s21 }
  0x56   : > { %p2707_p0 = por %p2706_p13, %p2705_p11 }
  0x57   : > { %p2703_p9 = pneg %p2702_p4 }
  0x58   : > { %p2709_p12 = por %p2708_p7, %p2707_p0 }
  0x5a   : > { %p2710_p2 = pnand %p2709_p12, %p2703_p9 }
  0x5c   : > { %2713 = shalt.err (!%p2710_p2)
}
  0x5d   : > { %s2714_s12 = scalar_lea.vmem %s3004_s3, 2048  ;;  %s2805_s27 = smov [#allocation8]  }
  0x5e   : > { %p2715_p3 = scmp.ne.s32.totalorder %s3004_s3, %s2714_s12  ;;  %s2719_s26 = sshll.u32 %s2805_s27, 4  ;;  %s2720_s26 = int_to_ptr.vmem [resolvable:$false] %s2719_s26 }
  0x5f   : > { %s2721_s30 = scalar_lea.vmem %s2720_s26, 4096  ;;  %p2722_p1 = scmp.lt.s32.totalorder %s3004_s3, %s2720_s26 }
  0x60   : > { %p2717_p5 = pnand %p2715_p3, %p2931_p10  ;;  %p2723_p4 = scmp.lt.s32.totalorder %s2721_s30, %s2714_s12 }
  0x62   : > { %p2718_p6 = pneg %p2717_p5  ;;  %p2724_p11 = por %p2723_p4, %p2722_p1 }
  0x64   : > { %p2725_p13 = pnand %p2724_p11, %p2718_p6 }
  0x66   : > { %2728 = shalt.err (!%p2725_p13)
}
  0x67   : > { %s3406_s18 = smov 4   ;;  %s3407_s19 = smov 64  }
  0x68   : > { %2460 = dma.hbm_to_vmem [thread:$0]  (!%p2911_p8), %s3002_s21, 2048, %s3004_s3, %s2925_s13, %s3407_s19, %s3407_s19, %s3406_s18  }
  0x69   : > { %p3408_p10 = scmp.ne.s32.totalorder %s3404_s25, 0 }
  0x6a   : > { %s416_s20 = sand.u32 (!%p3408_p10), 1, %s2789_s14   ;;  %p3409_p9 = scmp.ne.s32.totalorder (!%p3408_p10), %s3400_s22, 0 }
  0x6b   : > { %414 = sbr.rel (%p3408_p10) target bundleno = 4211 (0x1073), region = 60  ;;  %s417_s11 = scalar_lea.sflag (!%p3408_p10), [#allocation4], %s416_s20 }
  0x6c   : > { %s2439_s28 = smul.u32 (!%p3408_p10), 192, %s416_s20 }
  0x6e   : > { %s3034_s5 = scalar_lea.vmem (!%p3408_p10), [#allocation3], %s2439_s28 }
  0x72   : > { %2772 = dma.done.wait (%p3409_p9), %s417_s11, 3072  }
  0x73   : > { %2774 = vsyncadd (%p3409_p9), %s417_s11, 4294964224  ;;  %s425_s24 = sand.u32 1, %s2887_s17   ;;  %s2185_s15 = sshll.u32 %s416_s20, 6 }
  0x74   : > { %s426_s3 = scalar_lea.sflag [#allocation7], %s425_s24  ;;  %s3041_s13 = scalar_lea.vmem [#allocation6], %s2185_s15 }
  0x75   : > { %2776 = dma.done.wait (%p3409_p9), %s426_s3, 3072  }
  0x76   : > { %2778 = vsyncadd (%p3409_p9), %s426_s3, 4294964224  ;;  %s2186_s25 = sshll.u32 %s416_s20, 7  ;;  %p497_p8 = scmp.lt.s32.totalorder %s2887_s17, 1 }
  0x77   : > { %s3069_s29 = scalar_lea.vmem [#allocation8], %s2186_s25  ;;  %p2191_p0 = scmp.ne.s32.totalorder %s2887_s17, 0 }
  0x78   : > { %s498_s21 = scalar_select %p497_p8, %s2887_s17, 1 }
  0x79   : > { %518 = sbr.rel (%p2191_p0) target bundleno = 438 (0x1b6), region = 76  ;;  %v519_v0 = vld [vmem:[%s3378_s0] sm:$0xff] (!%p2191_p0)  ;;  %v520_v1 = vld [vmem:[%s3378_s0 + $0x8] sm:$0xff] (!%p2191_p0) }
  0x7a   : > { %s2440_s16 = smul.u32 3, %s498_s21  ;;  %s2277_s23 = sshll.u32 %s498_s21, 7  ;;  %523 = vadd.xlane.f32.xlu0 (!%p2191_p0), %v519_v0  ;;  %v2192_v17 = vld [vmem:[%s3380_s2] ss:$0 sm:$0xff] (!%p2191_p0)  ;;  %v2193_v19 = vld [vmem:[%s3380_s2 + $0x1] ss:$0 sm:$0xff] (!%p2191_p0) }
  0x7b   : > { %s3052_s27 = scalar_lea.vmem %s3384_s6, %s2277_s23  ;;  %s2189_s26 = sshll.u32 %s498_s21, 1 }
  0x7c   : > { %s3057_s19 = scalar_lea.vmem %s3382_s4, %s2440_s16  ;;  %s3062_s11 = scalar_lea.vmem %s3385_s7, %s2189_s26 }
  0x7d   : > { %s2190_s20 = sshll.u32 %s498_s21, 3 }
  0x7e   : > { %s3067_s3 = scalar_lea.vmem %s3387_s9, %s2190_s20  ;;  %525 = vadd.xlane.f32.xlu0 (!%p2191_p0), %v520_v1 }
 0x107   : > { %v524_v2 = vpop.xlane.xlu0 %523 }
 0x108   : > { %v528_v3 = vmul.f32 0.0078125, %v524_v2 }
 0x10a   : > { %v530_v4 = vsub.f32 %v519_v0, %v528_v3 }
 0x10b   : > { %v526_v5 = vpop.xlane.xlu0 %525 }
 0x10c   : > { %v529_v6 = vmul.f32 0.0078125, %v526_v5  ;;  %v532_v7 = vmul.f32 %v530_v4, %v530_v4 }
 0x10e   : > { %v531_v8 = vsub.f32 %v520_v1, %v529_v6  ;;  %534 = vadd.xlane.f32.xlu1 %v532_v7 }
 0x110   : > { %v533_v9 = vmul.f32 %v531_v8, %v531_v8 }
 0x112   : > { %536 = vadd.xlane.f32.xlu1 %v533_v9 }
 0x19b   : > { %v535_v10 = vpop.xlane.xlu1 %534 }
 0x19c   : > { %v538_v11 = vmul.f32 0.0078125, %v535_v10 }
 0x19e   : > { %v540_v12 = vadd.f32 1e-12, %v538_v11 }
 0x19f   : > { %v537_v13 = vpop.xlane.xlu1 %536 }
 0x1a0   : > { %2507 = vrsqrt.f32 %v540_v12  ;;  %v539_v14 = vmul.f32 0.0078125, %v537_v13 }
 0x1a2   : > { %v541_v15 = vadd.f32 1e-12, %v539_v14 }
 0x1a4   : > { %2509 = vrsqrt.f32 %v541_v15 }
 0x1aa   : > { %v2508_v16 = vpop.eup %2507 }
 0x1ab   : > { %v544_v18 = vmul.f32 %v2508_v16, %v530_v4 }
 0x1ad   : > { %v550_v20 = vmul.f32 %v2192_v17, %v544_v18 }
 0x1ae   : > { %v2510_v21 = vpop.eup %2509 }
 0x1af   : > { %v556_v22 = vadd.f32 %v2193_v19, %v550_v20  ;;  %v545_v23 = vmul.f32 %v2510_v21, %v531_v8 }
 0x1b1   : > { %558 = vst [vmem:[#allocation2] sm:$0xff] %v556_v22  ;;  %v551_v24 = vmul.f32 %v2192_v17, %v545_v23 }
 0x1b3   : > { %v557_v25 = vadd.f32 %v2193_v19, %v551_v24 }
 0x1b5   : > { %559 = vst [vmem:[#allocation2 + $0x8] sm:$0xff] %v557_v25 }
 0x1b6 PF: > { %v2511_v26 = vld [vmem:[%s3034_s5 + $0x4] ss:$12 sps:$4 sm:$0xff]   ;;  %v2513_v27 = vld [vmem:[%s3034_s5] ss:$12 sps:$4 sm:$0xff]   ;;  %v2806_v28 = vmov 0   ;;  %v2807_v46 = vmov 0.0   ;;  %v600_v47 = vlaneseq }
 0x1b7   : > { %775 = vmatprep.mubr.bf16.mxu0 %v2806_v28  ;;  %743 = vmatprep.subr.bf16.mxu0 %v2511_v26  ;;  %v2514_v29 = vld [vmem:[%s3034_s5 + $0x1c] ss:$12 sps:$4 sm:$0xff]   ;;  %v2516_v30 = vld [vmem:[%s3034_s5 + $0x18] ss:$12 sps:$4 sm:$0xff]   ;;  %v2517_v31 = vld [vmem:[%s3034_s5 + $0x34] ss:$12 sps:$4 sm:$0xff]  }
 0x1b8   : > { %744 = vmatpush1.bf16.msra.mxu0 %v2513_v27  ;;  %v2519_v32 = vld [vmem:[%s3034_s5 + $0x30] ss:$12 sps:$4 sm:$0xff]   ;;  %v2520_v33 = vld [vmem:[%s3034_s5 + $0x4c] ss:$12 sps:$4 sm:$0xff]   ;;  %v2522_v34 = vld [vmem:[%s3034_s5 + $0x48] ss:$12 sps:$4 sm:$0xff]   ;;  %2337 = vmatprep.subr.bf16.mxu1 %v2807_v46 }
 0x1b9   : > { %745 = vmatprep.subr.bf16.mxu0 %v2514_v29  ;;  %v2523_v35 = vld [vmem:[%s3034_s5 + $0x64] ss:$12 sps:$4 sm:$0xff]   ;;  %v2525_v36 = vld [vmem:[%s3034_s5 + $0x60] ss:$12 sps:$4 sm:$0xff]   ;;  %v2526_v37 = vld [vmem:[%s3034_s5 + $0x7c] ss:$12 sps:$4 sm:$0xff]  }
 0x1ba   : > { %v2528_v38 = vld [vmem:[%s3034_s5 + $0x78] ss:$12 sps:$4 sm:$0xff]   ;;  %v2529_v39 = vld [vmem:[%s3034_s5 + $0x94] ss:$12 sps:$4 sm:$0xff]   ;;  %v2531_v40 = vld [vmem:[%s3034_s5 + $0x90] ss:$12 sps:$4 sm:$0xff]  }
 0x1bb   : > { %v2532_v41 = vld [vmem:[%s3034_s5 + $0xac] ss:$12 sps:$4 sm:$0xff]   ;;  %v2534_v42 = vld [vmem:[%s3034_s5 + $0xa8] ss:$12 sps:$4 sm:$0xff]   ;;  %vm2808_vm0 = vmmov 0   ;;  %v3116_v48 = vshrl.u32 %v600_v47, 7 }
 0x1bc   : > { %746 = vmatpush1.bf16.msra.mxu0 %v2516_v30  ;;  %v3101_v43 = vld [vmem:[#allocation2] sm:$0xff]  ;;  %v3103_v44 = vld [vmem:[#allocation2 + $0x8] sm:$0xff]  ;;  %2353 = vmatprep.mubr.msk.bf16.mxu1 %vm2808_vm0, %v2807_v46  ;;  %vm846_vm1 = vcmask 261120   ;;  %v2536_v2 = vld [vmem:[%s3034_s5 + $0x20] ss:$12 sps:$4 sm:$0xff]   ;;  %vm898_vm2 = vcmask 130048  }
 0x1bd   : > { %747 = vmatprep.subr.bf16.mxu0 %v2517_v31  ;;  %v3107_v45 = vpack.c.bf16 %v3103_v44, %v3101_v43  ;;  %v3119_v49 = vsub.s32 0, %v3116_v48  ;;  %v3122_v50 = vld [vmem:[%s3057_s19] sm:$0x7]  ;;  %v3125_v51 = vsub.s32 1, %v3116_v48  ;;  %s2809_s19 = smov 96   ;;  %v3178_v17 = vld [vmem:[%s3379_s1 + $0x8] sm:$0xff] }
 0x1be   : > { %v2535_v1 = vld [vmem:[%s3034_s5 + $0x8] ss:$12 sps:$4 sm:$0xff]   ;;  %v2537_v3 = vld [vmem:[%s3034_s5 + $0x38] ss:$12 sps:$4 sm:$0xff]   ;;  %v2538_v4 = vld [vmem:[%s3034_s5 + $0x50] ss:$12 sps:$4 sm:$0xff]  }
 0x1bf   : > { %v603_v52 = vrot.slane %v3122_v50, %v3119_v49  ;;  %v607_v54 = vrot.slane %v3122_v50, %v3125_v51  ;;  %2338 = vmatpush3.bf16.msra.mxu1 %v2535_v1  ;;  %v2539_v7 = vld [vmem:[%s3034_s5 + $0x68] ss:$12 sps:$4 sm:$0xff]   ;;  %v2540_v8 = vld [vmem:[%s3034_s5 + $0x80] ss:$12 sps:$4 sm:$0xff]   ;;  %v2541_v10 = vld [vmem:[%s3034_s5 + $0x98] ss:$12 sps:$4 sm:$0xff]  }
 0x1c0   : > { %748 = vmatpush1.bf16.msra.mxu0 %v2519_v32  ;;  %2339 = vmatprep.subr.bf16.mxu1 %v2807_v46  ;;  %v2542_v11 = vld [vmem:[%s3034_s5 + $0xb0] ss:$12 sps:$4 sm:$0xff]   ;;  %s2810_s24 = smov 64   ;;  %s2811_s15 = smov 32  }
 0x1c1   : > { %749 = vmatprep.subr.bf16.mxu0 %v2520_v33  ;;  %v3173_v13 = vld [vmem:[%s3379_s1] sm:$0xff]  ;;  %p2270_p7 = scmp.ne.s32.totalorder %s2887_s17, 1 }
 0x1c3   : > { %2340 = vmatpush3.bf16.msra.mxu1 %v2536_v2 }
 0x1c4   : > { %750 = vmatpush1.bf16.msra.mxu0 %v2522_v34  ;;  %2341 = vmatprep.subr.bf16.mxu1 %v2807_v46 }
 0x1c5   : > { %751 = vmatprep.subr.bf16.mxu0 %v2523_v35 }
 0x1c7   : > { %2342 = vmatpush3.bf16.msra.mxu1 %v2537_v3 }
 0x1c8   : > { %752 = vmatpush1.bf16.msra.mxu0 %v2525_v36  ;;  %2343 = vmatprep.subr.bf16.mxu1 %v2807_v46 }
 0x1c9   : > { %753 = vmatprep.subr.bf16.mxu0 %v2526_v37 }
 0x1cb   : > { %2344 = vmatpush3.bf16.msra.mxu1 %v2538_v4 }
 0x1cc   : > { %754 = vmatpush1.bf16.msra.mxu0 %v2528_v38  ;;  %2345 = vmatprep.subr.bf16.mxu1 %v2807_v46 }
 0x1cd   : > { %755 = vmatprep.subr.bf16.mxu0 %v2529_v39 }
 0x1cf   : > { %2346 = vmatpush3.bf16.msra.mxu1 %v2539_v7 }
 0x1d0   : > { %756 = vmatpush1.bf16.msra.mxu0 %v2531_v40  ;;  %2347 = vmatprep.subr.bf16.mxu1 %v2807_v46 }
 0x1d1   : > { %757 = vmatprep.subr.bf16.mxu0 %v2532_v41  ;;  %v610_v41 = vsub.s32 2, %v3116_v48 }
 0x1d3   : > { %2348 = vmatpush3.bf16.msra.mxu1 %v2540_v8  ;;  %v611_v47 = vrot.slane %v3122_v50, %v610_v41 }
 0x1d4   : > { %758 = vmatpush1.bf16.msra.mxu0 %v2534_v42  ;;  %2349 = vmatprep.subr.bf16.mxu1 %v2807_v46 }
 0x1d5   : > { %2357 = vmatprep.subr.bf16.mxu0 %v2807_v46 }
 0x1d7   : > { %776 = vmatmul.mubr.bf16.vlgmr.msra.gmra.mrb[0].mxu0 %v3107_v45  ;;  %2350 = vmatpush3.bf16.msra.mxu1 %v2541_v10 }
 0x1d8   : > { %2359 = vmatprep.mubr.msk.bf16.mxu0 %vm2808_vm0, %v2807_v46  ;;  %2351 = vmatprep.subr.bf16.mxu1 %v2807_v46 }
 0x1db   : > { %2352 = vmatpush3.bf16.msra.mxu1 %v2542_v11 }
 0x1dc   : > { %2363 = vmatprep.subr.bf16.mxu1 %v2807_v46 }
 0x1de   : > { %2354 = vmatmul.mubr.bf16.vlgmr.msra.gmra.mrb[0].mxu1 %v3107_v45 }
 0x1df   : > { %2365 = vmatprep.mubr.msk.bf16.mxu1 %vm2808_vm0, %v2807_v46 }
 0x2aa   : > { %v777_v53 = vpop.f32.mrb[0].mxu0 }
 0x2ab   : > { %v779_v55 = vpop.f32.mrb[1].mxu0  ;;  %v778_v57 = vadd.f32 %v777_v53, %v603_v52 }
 0x2ac   : > { %v781_v56 = vpop.f32.mrb[2].mxu0  ;;  %v780_v60 = vadd.f32 %v779_v55, %v607_v54 }
 0x2ad   : > { %v782_v58 = vadd.f32 %v781_v56, %v603_v52  ;;  %v783_v59 = vpop.f32.mrb[3].mxu0 }
 0x2ae   : > { %v784_v61 = vadd.f32 %v783_v59, %v607_v54 }
 0x2af   : > { %v3131_v62 = vpack.c.bf16 %v782_v58, %v778_v57 }
 0x2b0   : > { %v3133_v63 = vpack.c.bf16 %v784_v61, %v780_v60 }
 0x2b1   : > { %v820_v42 = vpop.f32.mrb[0].mxu1 }
 0x2b2   : > { %971 = vrot.lane.b32.xlu0 %v3133_v63, %s2809_s19  ;;  %v851_v0 = vsel %vm846_vm1, %v3133_v63, 0  ;;  %v2355_v45 = vpop.f32.mrb[1].mxu1  ;;  %v821_v54 = vadd.f32 %v820_v42, %v611_v47 }
 0x2b3   : > { %2358 = vmatpush3.bf16.xpose.msra.mxu0 %v851_v0  ;;  %v823_v52 = vpop.f32.mrb[2].mxu1 }
 0x2b4   : > { %2369 = vmatprep.subr.bf16.mxu0 %v2807_v46  ;;  %v2356_v53 = vpop.f32.mrb[3].mxu1  ;;  %v824_v55 = vadd.f32 %v823_v52, %v611_v47 }
 0x2b6   : > { %968 = vrot.lane.b32.xlu0 %v3131_v62, %s2809_s19  ;;  %v3194_v56 = vpack.c.bf16 %v824_v55, %v821_v54 }
 0x2b8   : > { %2364 = vmatpush3.bf16.msra.mxu1 %v3194_v56 }
 0x2b9   : > { %2375 = vmatprep.subr.bf16.mxu1 %v2807_v46 }
 0x2ba   : > { %2360 = vmatmul.mubr.msk.bf16.vlgmr.msra.gmra.mrb[4].mxu0 %vm846_vm1, %v3131_v62 }
 0x2bb   : > { %2371 = vmatprep.mubr.msk.bf16.mxu0 %vm2808_vm0, %v2807_v46 }
 0x324   : > { %v972_v5 = vpop.permute.xlu0 %971 }
 0x325   : > { %v977_v6 = vsel %vm846_vm1, %v972_v5, 0 }
 0x326   : > { %2370 = vmatpush3.bf16.xpose.msra.mxu0 %v977_v6 }
 0x327   : > { %2381 = vmatprep.subr.bf16.mxu0 %v2807_v46 }
 0x328   : > { %v969_v9 = vpop.permute.xlu0 %968 }
 0x32d   : > { %2372 = vmatmul.mubr.msk.bf16.vlgmr.msra.gmra.mrb[8].mxu0 %vm846_vm1, %v969_v9 }
 0x32e   : > { %2385 = vmatprep.mubr.msk.bf16.mxu0 %vm2808_vm0, %v2807_v46 }
 0x38d   : > { %v887_v12 = vpop.f32.mrb[4].mxu0 }
 0x38e   : > { %v894_v14 = vmul.f32 0.17677669, %v887_v12  ;;  %v2361_v15 = vpop.f32.mrb[5].mxu0 }
 0x38f   : > { %v890_v16 = vpop.f32.mrb[6].mxu0 }
 0x390   : > { %v895_v18 = vmul.f32 0.17677669, %v890_v16  ;;  %v2362_v19 = vpop.f32.mrb[7].mxu0  ;;  %v896_v20 = vadd.f32 %v894_v14, %v3173_v13  ;;  %v2545_v16 = vld [vmem:[%s3041_s13 + $0x10] sm:$0xff]  }
 0x391   : > { %2382 = vmatpush3.bf16.msra.mxu0 %v2545_v16 }
 0x392   : > { %v899_v21 = vsel %vm898_vm2, %v896_v20, -inf  ;;  %v897_v22 = vadd.f32 %v895_v18, %v3178_v17  ;;  %v2546_v18 = vld [vmem:[%s3041_s13 + $0x18] sm:$0xff]   ;;  %2383 = vmatprep.subr.bf16.mxu0 %v2807_v46 }
 0x393   : > { %900 = vmax.xlane.f32.xlu1 %v899_v21 }
 0x394   : > { %v902_v23 = vsel %vm898_vm2, %v897_v22, -inf }
 0x395   : > { %2384 = vmatpush3.bf16.msra.mxu0 %v2546_v18 }
 0x396   : > { %2397 = vmatprep.subr.bf16.mxu0 %v2807_v46 }
 0x397   : > { %903 = vmax.xlane.f32.xlu1 %v902_v23 }
 0x400   : > { %v1013_v24 = vpop.f32.mrb[8].mxu0 }
 0x401   : > { %v1020_v25 = vmul.f32 0.17677669, %v1013_v24  ;;  %v2373_v26 = vpop.f32.mrb[9].mxu0 }
 0x402   : > { %v1016_v27 = vpop.f32.mrb[10].mxu0  ;;  %v2543_v26 = vld [vmem:[%s3041_s13] sm:$0xff]  }
 0x403   : > { %v1021_v29 = vmul.f32 0.17677669, %v1016_v27  ;;  %v2374_v30 = vpop.f32.mrb[11].mxu0  ;;  %v1022_v31 = vadd.f32 %v1020_v25, %v3173_v13 }
 0x405   : > { %v1024_v32 = vsel %vm898_vm2, %v1022_v31, -inf  ;;  %v1023_v33 = vadd.f32 %v1021_v29, %v3178_v17  ;;  %v2544_v29 = vld [vmem:[%s3041_s13 + $0x8] sm:$0xff]  }
 0x406   : > { %1025 = vmax.xlane.f32.xlu0 %v1024_v32 }
 0x407   : > { %v1027_v34 = vsel %vm898_vm2, %v1023_v33, -inf }
 0x408   : > { %1028 = vmax.xlane.f32.xlu1 %v1027_v34 }
 0x41c   : > { %1210 = vrot.lane.b32.xlu0 %v3133_v63, %s2810_s24 }
 0x420   : > { %v901_v35 = vpop.xlane.xlu1 %900 }
 0x421   : > { %v905_v36 = vsub.f32 %v896_v20, %v901_v35 }
 0x423   : > { %v907_v37 = vmul.f32 1.442695, %v905_v36 }
 0x424   : > { %v904_v38 = vpop.xlane.xlu1 %903 }
 0x425   : > { %2591 = vpow2.f32 %v907_v37  ;;  %v906_v39 = vsub.f32 %v897_v22, %v904_v38 }
 0x427   : > { %v909_v40 = vmul.f32 1.442695, %v906_v39 }
 0x429   : > { %2593 = vpow2.f32 %v909_v40 }
 0x42f   : > { %v2592_v57 = vpop.eup %2591 }
 0x430   : > { %v911_v58 = vsel %vm898_vm2, %v2592_v57, 0.0 }
 0x431   : > { %912 = vadd.xlane.f32.xlu1 %v911_v58 }
 0x433   : > { %v2594_v59 = vpop.eup %2593 }
 0x434   : > { %v914_v60 = vsel %vm898_vm2, %v2594_v59, 0.0 }
 0x435   : > { %915 = vadd.xlane.f32.xlu1 %v914_v60 }
 0x493   : > { %v1026_v61 = vpop.xlane.xlu0 %1025 }
 0x494   : > { %v1030_v50 = vsub.f32 %v1022_v31, %v1026_v61 }
 0x495   : > { %v1029_v0 = vpop.xlane.xlu1 %1028 }
 0x496   : > { %v1032_v1 = vmul.f32 1.442695, %v1030_v50  ;;  %v1031_v2 = vsub.f32 %v1023_v33, %v1029_v0 }
 0x497   : > { %v1211_v37 = vpop.permute.xlu0 %1210 }
 0x498   : > { %2595 = vpow2.f32 %v1032_v1  ;;  %v1034_v3 = vmul.f32 1.442695, %v1031_v2  ;;  %v1216_v42 = vsel %vm846_vm1, %v1211_v37, 0 }
 0x49a   : > { %2597 = vpow2.f32 %v1034_v3 }
 0x4a2   : > { %v2596_v4 = vpop.eup %2595 }
 0x4a3   : > { %v1036_v5 = vsel %vm898_vm2, %v2596_v4, 0.0 }
 0x4a4   : > { %v2598_v6 = vpop.eup %2597  ;;  %1037 = vadd.xlane.f32.xlu1 %v1036_v5 }
 0x4a5   : > { %v1039_v7 = vsel %vm898_vm2, %v2598_v6, 0.0 }
 0x4a8   : > { %1040 = vadd.xlane.f32.xlu1 %v1039_v7 }
 0x4b9   : > { %1048 = vrot.lane.b32.xlu1 %v3194_v56, %s2809_s19 }
 0x4bd   : > { %1208 = vrot.lane.b32.xlu1 %v3131_v62, %s2810_s24 }
 0x4be   : > { %v913_v8 = vpop.xlane.xlu1 %912 }
 0x4bf   : > { %2599 = vrcp.f32 %v913_v8 }
 0x4c2   : > { %v916_v9 = vpop.xlane.xlu1 %915 }
 0x4c3   : > { %2601 = vrcp.f32 %v916_v9 }
 0x4c9   : > { %v2600_v10 = vpop.eup %2599 }
 0x4ca   : > { %v919_v12 = vmul.f32 %v2600_v10, %v2592_v57 }
 0x4cd   : > { %v2602_v11 = vpop.eup %2601 }
 0x4ce   : > { %v920_v14 = vmul.f32 %v2602_v11, %v2594_v59 }
 0x4d0   : > { %v921_v15 = vpack.c.bf16 %v920_v14, %v919_v12 }
 0x4d2   : > { %2366 = vmatmul.mubr.msk.bf16.vlgmr.msra.gmra.mrb[4].mxu1 %vm898_vm2, %v921_v15 }
 0x4d3   : > { %2377 = vmatprep.mubr.msk.bf16.mxu1 %vm2808_vm0, %v2807_v46 }
 0x531   : > { %v1038_v19 = vpop.xlane.xlu1 %1037 }
 0x532   : > { %2603 = vrcp.f32 %v1038_v19 }
 0x535   : > { %v1041_v20 = vpop.xlane.xlu1 %1040 }
 0x536   : > { %2605 = vrcp.f32 %v1041_v20 }
 0x539   : > { %v1049_v21 = vpop.permute.xlu1 %1048 }
 0x53a   : > { %2376 = vmatpush3.bf16.msra.mxu1 %v1049_v21 }
 0x53b   : > { %2389 = vmatprep.subr.bf16.mxu1 %v2807_v46 }
 0x53c   : > { %v2604_v22 = vpop.eup %2603 }
 0x53d   : > { %v1044_v24 = vmul.f32 %v2604_v22, %v2596_v4  ;;  %v1209_v45 = vpop.permute.xlu1 %1208  ;;  %v2547_v22 = vld [vmem:[%s3041_s13 + $0x20] sm:$0xff]  }
 0x540   : > { %v2606_v23 = vpop.eup %2605 }
 0x541   : > { %v1045_v25 = vmul.f32 %v2606_v23, %v2598_v6 }
 0x543   : > { %v1046_v27 = vpack.c.bf16 %v1045_v25, %v1044_v24 }
 0x545   : > { %2378 = vmatmul.mubr.msk.bf16.vlgmr.msra.gmra.mrb[8].mxu1 %vm898_vm2, %v1046_v27 }
 0x546   : > { %2390 = vmatpush3.bf16.msra.mxu1 %v2543_v26  ;;  %2393 = vmatprep.mubr.msk.bf16.mxu1 %vm2808_vm0, %v2807_v46 }
 0x547   : > { %2391 = vmatprep.subr.bf16.mxu1 %v2807_v46 }
 0x54a   : > { %2392 = vmatpush3.bf16.msra.mxu1 %v2544_v29 }
 0x54b   : > { %2403 = vmatprep.subr.bf16.mxu1 %v2807_v46 }
 0x5a5   : > { %v959_v30 = vpop.f32.mrb[4].mxu1 }
 0x5a6   : > { %v2367_v31 = vpop.f32.mrb[5].mxu1 }
 0x5a7   : > { %v962_v32 = vpop.f32.mrb[6].mxu1 }
 0x5a8   : > { %v966_v33 = vpack.c.bf16 %v962_v32, %v959_v30  ;;  %v2368_v34 = vpop.f32.mrb[7].mxu1  ;;  %v2548_v32 = vld [vmem:[%s3041_s13 + $0x28] sm:$0xff]  }
 0x5aa   : > { %2394 = vmatmul.mubr.msk.bf16.vlgmr.msra.gmra.mrb[12].mxu1 %vm846_vm1, %v966_v33 }
 0x5ab   : > { %2405 = vmatprep.mubr.msk.bf16.mxu1 %vm2808_vm0, %v2807_v46 }
 0x618   : > { %v1088_v35 = vpop.f32.mrb[8].mxu1 }
 0x619   : > { %v2379_v36 = vpop.f32.mrb[9].mxu1 }
 0x61a   : > { %v1091_v38 = vpop.f32.mrb[10].mxu1 }
 0x61b   : > { %v1095_v39 = vpack.c.bf16 %v1091_v38, %v1088_v35  ;;  %v2380_v40 = vpop.f32.mrb[11].mxu1 }
 0x61d   : > { %2386 = vmatmul.mubr.msk.bf16.vlgmr.msra.gmra.mrb[12].mxu0 %vm846_vm1, %v1095_v39 }
 0x61e   : > { %2398 = vmatpush3.bf16.xpose.msra.mxu0 %v1216_v42  ;;  %2399 = vmatprep.mubr.msk.bf16.mxu0 %vm2808_vm0, %v2807_v46 }
 0x61f   : > { %2409 = vmatprep.subr.bf16.mxu0 %v2807_v46 }
 0x625   : > { %2400 = vmatmul.mubr.msk.bf16.vlgmr.msra.gmra.mrb[16].mxu0 %vm846_vm1, %v1209_v45 }
 0x626   : > { %2413 = vmatprep.mubr.msk.bf16.mxu0 %vm2808_vm0, %v2807_v46  ;;  %2410 = vmatpush3.bf16.msra.mxu0 %v2547_v22 }
 0x627   : > { %2411 = vmatprep.subr.bf16.mxu0 %v2807_v46 }
 0x62a   : > { %2412 = vmatpush3.bf16.msra.mxu0 %v2548_v32 }
 0x62b   : > { %2423 = vmatprep.subr.bf16.mxu0 %v2807_v46 }
 0x67d   : > { %v1201_v47 = vpop.f32.mrb[12].mxu1 }
 0x67e   : > { %v2395_v52 = vpop.f32.mrb[13].mxu1 }
 0x67f   : > { %v1204_v53 = vpop.f32.mrb[14].mxu1 }
 0x680   : > { %v2396_v54 = vpop.f32.mrb[15].mxu1 }
 0x6f0   : > { %v1145_v55 = vpop.f32.mrb[12].mxu0 }
 0x6f1   : > { %v3232_v57 = vadd.f32 %v1201_v47, %v1145_v55  ;;  %v2387_v58 = vpop.f32.mrb[13].mxu0 }
 0x6f2   : > { %v1148_v59 = vpop.f32.mrb[14].mxu0 }
 0x6f3   : > { %v3234_v60 = vadd.f32 %v1204_v53, %v1148_v59  ;;  %v2388_v61 = vpop.f32.mrb[15].mxu0 }
 0x6f8   : > { %v1252_v50 = vpop.f32.mrb[16].mxu0 }
 0x6f9   : > { %v1259_v0 = vmul.f32 0.17677669, %v1252_v50  ;;  %v2401_v1 = vpop.f32.mrb[17].mxu0 }
 0x6fa   : > { %v1255_v2 = vpop.f32.mrb[18].mxu0 }
 0x6fb   : > { %v1260_v3 = vmul.f32 0.17677669, %v1255_v2  ;;  %v2402_v4 = vpop.f32.mrb[19].mxu0  ;;  %v1261_v5 = vadd.f32 %v1259_v0, %v3173_v13 }
 0x6fd   : > { %v1263_v6 = vsel %vm898_vm2, %v1261_v5, -inf  ;;  %v1262_v7 = vadd.f32 %v1260_v3, %v3178_v17 }
 0x6fe   : > { %1264 = vmax.xlane.f32.xlu1 %v1263_v6 }
 0x6ff   : > { %v1266_v8 = vsel %vm898_vm2, %v1262_v7, -inf }
 0x700   : > { %1267 = vmax.xlane.f32.xlu0 %v1266_v8 }
 0x716   : > { %1286 = vrot.lane.b32.xlu0 %v3194_v56, %s2810_s24 }
 0x78b   : > { %v1265_v9 = vpop.xlane.xlu1 %1264 }
 0x78c   : > { %v1269_v10 = vsub.f32 %v1261_v5, %v1265_v9 }
 0x78d   : > { %v1268_v11 = vpop.xlane.xlu0 %1267 }
 0x78e   : > { %v1271_v12 = vmul.f32 1.442695, %v1269_v10  ;;  %v1270_v14 = vsub.f32 %v1262_v7, %v1268_v11 }
 0x790   : > { %2607 = vpow2.f32 %v1271_v12  ;;  %v1273_v15 = vmul.f32 1.442695, %v1270_v14 }
 0x791   : > { %v1287_v16 = vpop.permute.xlu0 %1286 }
 0x792   : > { %2609 = vpow2.f32 %v1273_v15  ;;  %2404 = vmatpush3.bf16.msra.mxu1 %v1287_v16 }
 0x793   : > { %2417 = vmatprep.subr.bf16.mxu1 %v2807_v46 }
 0x79a   : > { %v2608_v18 = vpop.eup %2607 }
 0x79b   : > { %v1275_v19 = vsel %vm898_vm2, %v2608_v18, 0.0 }
 0x79c   : > { %v2610_v20 = vpop.eup %2609  ;;  %1276 = vadd.xlane.f32.xlu1 %v1275_v19 }
 0x79d   : > { %v1278_v21 = vsel %vm898_vm2, %v2610_v20, 0.0 }
 0x7a0   : > { %1279 = vadd.xlane.f32.xlu1 %v1278_v21 }
 0x7b1   : > { %1394 = vrot.lane.b32.xlu1 %v3133_v63, %s2811_s15 }
 0x7b5   : > { %1392 = vrot.lane.b32.xlu1 %v3131_v62, %s2811_s15 }
 0x829   : > { %v1277_v23 = vpop.xlane.xlu1 %1276 }
 0x82a   : > { %2611 = vrcp.f32 %v1277_v23  ;;  %v3281_v23 = vld [vmem:[%s3067_s3] sm:$0xff] }
 0x82d   : > { %v1280_v24 = vpop.xlane.xlu1 %1279 }
 0x82e   : > { %2613 = vrcp.f32 %v1280_v24  ;;  %v1579_v24 = vrot.slane %v3281_v23, %v3119_v49 }
 0x831   : > { %v1395_v30 = vpop.permute.xlu1 %1394 }
 0x832   : > { %v1400_v63 = vsel %vm846_vm1, %v1395_v30, 0 }
 0x834   : > { %v2612_v25 = vpop.eup %2611 }
 0x835   : > { %v1283_v27 = vmul.f32 %v2612_v25, %v2608_v18  ;;  %v1393_v62 = vpop.permute.xlu1 %1392 }
 0x838   : > { %v2614_v26 = vpop.eup %2613 }
 0x839   : > { %v1284_v29 = vmul.f32 %v2614_v26, %v2610_v20 }
 0x83b   : > { %v1285_v31 = vpack.c.bf16 %v1284_v29, %v1283_v27 }
 0x83d   : > { %2406 = vmatmul.mubr.msk.bf16.vlgmr.msra.gmra.mrb[16].mxu1 %vm898_vm2, %v1285_v31 }
 0x83e   : > { %2418 = vmatpush3.bf16.xpose.msra.mxu1 %v1400_v63  ;;  %2419 = vmatprep.mubr.msk.bf16.mxu1 %vm2808_vm0, %v2807_v46 }
 0x83f   : > { %2429 = vmatprep.subr.bf16.mxu1 %v2807_v46 }
 0x845   : > { %2420 = vmatmul.mubr.msk.bf16.vlgmr.msra.gmra.mrb[20].mxu1 %vm846_vm1, %v1393_v62 }
 0x846   : > { %2433 = vmatprep.mubr.msk.bf16.mxu1 %vm2808_vm0, %v2807_v46 }
 0x910   : > { %v1326_v33 = vpop.f32.mrb[16].mxu1 }
 0x911   : > { %v2407_v34 = vpop.f32.mrb[17].mxu1 }
 0x912   : > { %v1329_v35 = vpop.f32.mrb[18].mxu1  ;;  %v2553_v34 = vld [vmem:[%s3052_s27 + $0x4] ss:$8 sps:$4 sm:$0xff]  }
 0x913   : > { %v1333_v36 = vpack.c.bf16 %v1329_v35, %v1326_v33  ;;  %v2408_v37 = vpop.f32.mrb[19].mxu1  ;;  %v2551_v33 = vld [vmem:[%s3052_s27] ss:$8 sps:$4 sm:$0xff]   ;;  %v2556_v35 = vld [vmem:[%s3052_s27 + $0x14] ss:$8 sps:$4 sm:$0xff]  }
 0x915   : > { %2414 = vmatmul.mubr.msk.bf16.vlgmr.msra.gmra.mrb[20].mxu0 %vm846_vm1, %v1333_v36  ;;  %v2554_v36 = vld [vmem:[%s3052_s27 + $0x10] ss:$8 sps:$4 sm:$0xff]  }
 0x916   : > { %2425 = vmatprep.mubr.msk.bf16.mxu0 %vm2808_vm0, %v2807_v46 }
 0x918   : > { %v1436_v38 = vpop.f32.mrb[20].mxu1 }
 0x919   : > { %v1443_v39 = vmul.f32 0.17677669, %v1436_v38  ;;  %v2421_v40 = vpop.f32.mrb[21].mxu1 }
 0x91a   : > { %v1439_v42 = vpop.f32.mrb[22].mxu1 }
 0x91b   : > { %v1444_v45 = vmul.f32 0.17677669, %v1439_v42  ;;  %v2422_v47 = vpop.f32.mrb[23].mxu1  ;;  %v1445_v52 = vadd.f32 %v1443_v39, %v3173_v13 }
 0x91c   : > { %v2559_v47 = vld [vmem:[%s3052_s27 + $0x24] ss:$8 sps:$4 sm:$0xff]  }
 0x91d   : > { %v1447_v53 = vsel %vm898_vm2, %v1445_v52, -inf  ;;  %v1446_v54 = vadd.f32 %v1444_v45, %v3178_v17 }
 0x91e   : > { %1448 = vmax.xlane.f32.xlu0 %v1447_v53  ;;  %v2562_v53 = vld [vmem:[%s3052_s27 + $0x34] ss:$8 sps:$4 sm:$0xff]  }
 0x91f   : > { %v1450_v55 = vsel %vm898_vm2, %v1446_v54, -inf }
 0x920   : > { %1451 = vmax.xlane.f32.xlu1 %v1450_v55  ;;  %v2565_v55 = vld [vmem:[%s3052_s27 + $0x44] ss:$8 sps:$4 sm:$0xff]  }
 0x931   : > { %1470 = vrot.lane.b32.xlu1 %v3194_v56, %s2811_s15  ;;  %v2549_v56 = vld [vmem:[%s3041_s13 + $0x30] sm:$0xff]  }
 0x932   : > { %2430 = vmatpush3.bf16.msra.mxu1 %v2549_v56 }
 0x933   : > { %2431 = vmatprep.subr.bf16.mxu1 %v2807_v46  ;;  %v2550_v46 = vld [vmem:[%s3041_s13 + $0x38] sm:$0xff]  }
 0x936   : > { %2432 = vmatpush3.bf16.msra.mxu1 %v2550_v46  ;;  %v2576_v46 = vld [vmem:[%s3069_s29] sm:$0xff]  }
 0x9ab   : > { %v1449_v58 = vpop.xlane.xlu0 %1448 }
 0x9ac   : > { %v1453_v59 = vsub.f32 %v1445_v52, %v1449_v58  ;;  %v2557_v52 = vld [vmem:[%s3052_s27 + $0x20] ss:$8 sps:$4 sm:$0xff]  }
 0x9ad   : > { %v1452_v61 = vpop.xlane.xlu1 %1451  ;;  %v2563_v58 = vld [vmem:[%s3052_s27 + $0x40] ss:$8 sps:$4 sm:$0xff]  }
 0x9ae   : > { %v1455_v50 = vmul.f32 1.442695, %v1453_v59  ;;  %v1454_v0 = vsub.f32 %v1446_v54, %v1452_v61  ;;  %v2560_v54 = vld [vmem:[%s3052_s27 + $0x30] ss:$8 sps:$4 sm:$0xff]   ;;  %v2568_v59 = vld [vmem:[%s3052_s27 + $0x54] ss:$8 sps:$4 sm:$0xff]  }
 0x9af   : > { %v2566_v61 = vld [vmem:[%s3052_s27 + $0x50] ss:$8 sps:$4 sm:$0xff]  }
 0x9b0   : > { %2615 = vpow2.f32 %v1455_v50  ;;  %v1457_v1 = vmul.f32 1.442695, %v1454_v0  ;;  %v2571_v50 = vld [vmem:[%s3052_s27 + $0x64] ss:$8 sps:$4 sm:$0xff]   ;;  %v2569_v0 = vld [vmem:[%s3052_s27 + $0x60] ss:$8 sps:$4 sm:$0xff]  }
 0x9b1   : > { %v1471_v13 = vpop.permute.xlu1 %1470 }
 0x9b2   : > { %2617 = vpow2.f32 %v1457_v1  ;;  %2424 = vmatpush3.bf16.msra.mxu0 %v1471_v13  ;;  %v2574_v1 = vld [vmem:[%s3052_s27 + $0x74] ss:$8 sps:$4 sm:$0xff]   ;;  %v2572_v13 = vld [vmem:[%s3052_s27 + $0x70] ss:$8 sps:$4 sm:$0xff]  }
 0x9b3   : > { %1728 = vmatprep.subr.bf16.mxu0 %v2553_v34 }
 0x9ba   : > { %v2616_v2 = vpop.eup %2615 }
 0x9bb   : > { %v1459_v17 = vsel %vm898_vm2, %v2616_v2, 0.0 }
 0x9bc   : > { %v2618_v3 = vpop.eup %2617  ;;  %1460 = vadd.xlane.f32.xlu0 %v1459_v17 }
 0x9bd   : > { %v1462_v4 = vsel %vm898_vm2, %v2618_v3, 0.0 }
 0x9c0   : > { %1463 = vadd.xlane.f32.xlu0 %v1462_v4 }
 0x9e8   : > { %v1383_v5 = vpop.f32.mrb[20].mxu0 }
 0x9e9   : > { %v1390_v6 = vadd.f32 %v1383_v5, %v3232_v57  ;;  %v2415_v7 = vpop.f32.mrb[21].mxu0 }
 0x9ea   : > { %v1386_v8 = vpop.f32.mrb[22].mxu0  ;;  %v1610_v7 = vrot.slane %v3281_v23, %v3125_v51 }
 0x9eb   : > { %v1391_v9 = vadd.f32 %v1386_v8, %v3234_v60  ;;  %v2416_v10 = vpop.f32.mrb[23].mxu0 }
 0x9ec   : > { %v1616_v10 = vrot.slane %v3281_v23, %v610_v41  ;;  %v2577_v41 = vld [vmem:[%s3069_s29 + $0x48] sm:$0xff]  }
 0xa49   : > { %v1461_v11 = vpop.xlane.xlu0 %1460 }
 0xa4a   : > { %2619 = vrcp.f32 %v1461_v11 }
 0xa4d   : > { %v1464_v12 = vpop.xlane.xlu0 %1463 }
 0xa4e   : > { %2621 = vrcp.f32 %v1464_v12 }
 0xa54   : > { %v2620_v14 = vpop.eup %2619 }
 0xa55   : > { %v1467_v16 = vmul.f32 %v2620_v14, %v2616_v2 }
 0xa58   : > { %v2622_v15 = vpop.eup %2621 }
 0xa59   : > { %v1468_v18 = vmul.f32 %v2622_v15, %v2618_v3 }
 0xa5b   : > { %v1469_v19 = vpack.c.bf16 %v1468_v18, %v1467_v16 }
 0xa5d   : > { %2426 = vmatmul.mubr.msk.bf16.vlgmr.msra.gmra.mrb[24].mxu0 %vm898_vm2, %v1469_v19  ;;  %v2575_v19 = vld [vmem:[%s3069_s29 + $0x40] sm:$0xff]  }
 0xa5e   : > { %1760 = vmatprep.mubr.bf16.mxu0 %v2806_v28  ;;  %1729 = vmatpush1.bf16.msra.mxu0 %v2551_v33 }
 0xa5f   : > { %1730 = vmatprep.subr.bf16.mxu0 %v2556_v35  ;;  %2315 = vmatprep.subr.bf16.mxu1 %v2575_v19 }
 0xa62   : > { %1731 = vmatpush1.bf16.msra.mxu0 %v2554_v36 }
 0xa63   : > { %1732 = vmatprep.subr.bf16.mxu0 %v2559_v47 }
 0xa66   : > { %1733 = vmatpush1.bf16.msra.mxu0 %v2557_v52 }
 0xa67   : > { %1734 = vmatprep.subr.bf16.mxu0 %v2562_v53 }
 0xa6a   : > { %1735 = vmatpush1.bf16.msra.mxu0 %v2560_v54 }
 0xa6b   : > { %1736 = vmatprep.subr.bf16.mxu0 %v2565_v55 }
 0xa6e   : > { %1737 = vmatpush1.bf16.msra.mxu0 %v2563_v58 }
 0xa6f   : > { %1738 = vmatprep.subr.bf16.mxu0 %v2568_v59 }
 0xa72   : > { %1739 = vmatpush1.bf16.msra.mxu0 %v2566_v61 }
 0xa73   : > { %1740 = vmatprep.subr.bf16.mxu0 %v2571_v50 }
 0xa76   : > { %1741 = vmatpush1.bf16.msra.mxu0 %v2569_v0 }
 0xa77   : > { %1742 = vmatprep.subr.bf16.mxu0 %v2574_v1 }
 0xa7a   : > { %1743 = vmatpush1.bf16.msra.mxu0 %v2572_v13 }
 0xb30   : > { %v1510_v57 = vpop.f32.mrb[24].mxu0 }
 0xb31   : > { %v2427_v20 = vpop.f32.mrb[25].mxu0 }
 0xb32   : > { %v1513_v60 = vpop.f32.mrb[26].mxu0  ;;  %v2579_v20 = vld [vmem:[%s3069_s29 + $0x50] sm:$0xff]  }
 0xb33   : > { %v1517_v21 = vpack.c.bf16 %v1513_v60, %v1510_v57  ;;  %v2428_v22 = vpop.f32.mrb[27].mxu0  ;;  %v2578_v57 = vld [vmem:[%s3069_s29 + $0x8] sm:$0xff]   ;;  %v2580_v60 = vld [vmem:[%s3069_s29 + $0x10] sm:$0xff]  }
 0xb34   : > { %v2582_v22 = vld [vmem:[%s3069_s29 + $0x18] sm:$0xff]  }
 0xb35   : > { %2434 = vmatmul.mubr.msk.bf16.vlgmr.msra.gmra.mrb[24].mxu1 %vm846_vm1, %v1517_v21  ;;  %v2581_v21 = vld [vmem:[%s3069_s29 + $0x58] sm:$0xff]  }
 0xb36   : > { %2316 = vmatpush3.bf16.msra.mxu1 %v2576_v46 }
 0xb37   : > { %2317 = vmatprep.subr.bf16.mxu1 %v2577_v41 }
 0xb3a   : > { %2318 = vmatpush3.bf16.msra.mxu1 %v2578_v57 }
 0xb3b   : > { %2319 = vmatprep.subr.bf16.mxu1 %v2579_v20 }
 0xb3e   : > { %2320 = vmatpush3.bf16.msra.mxu1 %v2580_v60  ;;  %v1843_v60 = vsub.s32 3, %v3116_v48 }
 0xb3f   : > { %2321 = vmatprep.subr.bf16.mxu1 %v2581_v21 }
 0xb42   : > { %2322 = vmatpush3.bf16.msra.mxu1 %v2582_v22  ;;  %v1844_v22 = vrot.slane %v3281_v23, %v1843_v60 }
 0xc08   : > { %v1567_v25 = vpop.f32.mrb[24].mxu1 }
 0xc09   : > { %v1574_v26 = vadd.f32 %v1567_v25, %v1390_v6  ;;  %v2435_v28 = vpop.f32.mrb[25].mxu1  ;;  %v2584_v25 = vld [vmem:[%s3069_s29 + $0x20] sm:$0xff]  }
 0xc0a   : > { %v1570_v27 = vpop.f32.mrb[26].mxu1  ;;  %v2586_v28 = vld [vmem:[%s3069_s29 + $0x28] sm:$0xff]  }
 0xc0b   : > { %v1580_v29 = vadd.f32 %v1579_v24, %v1574_v26  ;;  %v1575_v30 = vadd.f32 %v1570_v27, %v1391_v9  ;;  %v2436_v31 = vpop.f32.mrb[27].mxu1  ;;  %v2585_v26 = vld [vmem:[%s3069_s29 + $0x68] sm:$0xff]   ;;  %v2587_v27 = vld [vmem:[%s3069_s29 + $0x70] sm:$0xff]  }
 0xc0c   : > { %v2590_v31 = vld [vmem:[%s3069_s29 + $0x38] sm:$0xff]  }
 0xc0d   : > { %v1581_v63 = vadd.f32 %v1579_v24, %v1575_v30  ;;  %v1582_v62 = vadd.f32 %v1580_v29, %v3101_v43  ;;  %v2583_v24 = vld [vmem:[%s3069_s29 + $0x60] sm:$0xff]   ;;  %v2588_v29 = vld [vmem:[%s3069_s29 + $0x30] sm:$0xff]   ;;  %v2589_v30 = vld [vmem:[%s3069_s29 + $0x78] sm:$0xff]  }
 0xc0e   : > { %2323 = vmatprep.subr.bf16.mxu1 %v2583_v24 }
 0xc0f   : > { %1584 = vadd.xlane.f32.xlu0 %v1582_v62  ;;  %v1583_v32 = vadd.f32 %v1581_v63, %v3103_v44  ;;  %2324 = vmatpush3.bf16.msra.mxu1 %v2584_v25  ;;  %v1636_v63 = vld [vmem:[%s3062_s11] sm:$0x3] }
 0xc10   : > { %2325 = vmatprep.subr.bf16.mxu1 %v2585_v26 }
 0xc13   : > { %1586 = vadd.xlane.f32.xlu0 %v1583_v32  ;;  %2326 = vmatpush3.bf16.msra.mxu1 %v2586_v28 }
 0xc14   : > { %2327 = vmatprep.subr.bf16.mxu1 %v2587_v27 }
 0xc17   : > { %2328 = vmatpush3.bf16.msra.mxu1 %v2588_v29 }
 0xc18   : > { %2329 = vmatprep.subr.bf16.mxu1 %v2589_v30 }
 0xc1b   : > { %2330 = vmatpush3.bf16.msra.mxu1 %v2590_v31 }
 0xc9c   : > { %v1585_v37 = vpop.xlane.xlu0 %1584 }
 0xc9d   : > { %v1589_v38 = vmul.f32 0.0078125, %v1585_v37 }
 0xc9f   : > { %v1591_v39 = vsub.f32 %v1582_v62, %v1589_v38  ;;  %v1641_v62 = vrot.slane %v1636_v63, %v3119_v49 }
 0xca0   : > { %v1587_v43 = vpop.xlane.xlu0 %1586 }
 0xca1   : > { %v1590_v44 = vmul.f32 0.0078125, %v1587_v43  ;;  %v1593_v40 = vmul.f32 %v1591_v39, %v1591_v39 }
 0xca3   : > { %v1592_v42 = vsub.f32 %v1583_v32, %v1590_v44  ;;  %1595 = vadd.xlane.f32.xlu0 %v1593_v40  ;;  %v1645_v32 = vrot.slane %v1636_v63, %v3125_v51 }
 0xca5   : > { %v1594_v45 = vmul.f32 %v1592_v42, %v1592_v42 }
 0xca7   : > { %1597 = vadd.xlane.f32.xlu0 %v1594_v45 }
 0xd30   : > { %v1596_v2 = vpop.xlane.xlu0 %1595 }
 0xd31   : > { %v1599_v17 = vmul.f32 0.0078125, %v1596_v2 }
 0xd33   : > { %v1601_v3 = vadd.f32 1e-12, %v1599_v17 }
 0xd34   : > { %v1598_v4 = vpop.xlane.xlu0 %1597 }
 0xd35   : > { %2623 = vrsqrt.f32 %v1601_v3  ;;  %v1600_v56 = vmul.f32 0.0078125, %v1598_v4 }
 0xd37   : > { %v1602_v5 = vadd.f32 1e-12, %v1600_v56 }
 0xd39   : > { %2625 = vrsqrt.f32 %v1602_v5 }
 0xd3f   : > { %v2624_v6 = vpop.eup %2623 }
 0xd40   : > { %v1605_v8 = vmul.f32 %v2624_v6, %v1591_v39 }
 0xd42   : > { %v1611_v12 = vmul.f32 %v1610_v7, %v1605_v8 }
 0xd43   : > { %v2626_v9 = vpop.eup %2625 }
 0xd44   : > { %v1606_v11 = vmul.f32 %v2626_v9, %v1592_v42  ;;  %v3308_v15 = vadd.f32 %v1616_v10, %v1611_v12 }
 0xd46   : > { %v1612_v14 = vmul.f32 %v1610_v7, %v1606_v11 }
 0xd48   : > { %v3310_v16 = vadd.f32 %v1616_v10, %v1612_v14 }
 0xd4a   : > { %v1619_v18 = vpack.c.bf16 %v3310_v16, %v3308_v15 }
 0xd4c   : > { %1761 = vmatmul.mubr.bf16.vlgmr.msra.gmra.mrb[28].mxu0 %v1619_v18 }
 0xe1f   : > { %v1762_v33 = vpop.f32.mrb[28].mxu0 }
 0xe20   : > { %v1763_v34 = vadd.f32 %v1762_v33, %v1641_v62  ;;  %v1764_v35 = vpop.f32.mrb[29].mxu0 }
 0xe21   : > { %v1765_v36 = vadd.f32 %v1764_v35, %v1645_v32  ;;  %v1766_v37 = vpop.f32.mrb[30].mxu0 }
 0xe22   : > { %v1771_v38 = vmul.f32 %v1763_v34, %v1763_v34  ;;  %v1767_v39 = vadd.f32 %v1766_v37, %v1641_v62  ;;  %v1768_v43 = vpop.f32.mrb[31].mxu0 }
 0xe23   : > { %v1772_v44 = vmul.f32 %v1765_v36, %v1765_v36  ;;  %v1769_v40 = vadd.f32 %v1768_v43, %v1645_v32 }
 0xe24   : > { %v1775_v42 = vmul.f32 %v1771_v38, %v1763_v34  ;;  %v1773_v45 = vmul.f32 %v1767_v39, %v1767_v39 }
 0xe25   : > { %v1776_v47 = vmul.f32 %v1772_v44, %v1765_v36  ;;  %v1774_v52 = vmul.f32 %v1769_v40, %v1769_v40 }
 0xe26   : > { %v1779_v53 = vmul.f32 0.044715, %v1775_v42  ;;  %v1777_v54 = vmul.f32 %v1773_v45, %v1767_v39  ;;  %v2014_v45 = vsub.s32 5, %v3116_v48 }
 0xe27   : > { %v1780_v55 = vmul.f32 0.044715, %v1776_v47  ;;  %v1778_v49 = vmul.f32 %v1774_v52, %v1769_v40 }
 0xe28   : > { %v1783_v58 = vadd.f32 %v1779_v53, %v1763_v34  ;;  %v1781_v51 = vmul.f32 0.044715, %v1777_v54  ;;  %v2015_v53 = vrot.slane %v3281_v23, %v2014_v45 }
 0xe29   : > { %v1784_v59 = vadd.f32 %v1780_v55, %v1765_v36  ;;  %v1782_v61 = vmul.f32 0.044715, %v1778_v49 }
 0xe2a   : > { %v1787_v50 = vmul.f32 0.7978846, %v1783_v58  ;;  %v1785_v0 = vadd.f32 %v1781_v51, %v1767_v39 }
 0xe2b   : > { %v1788_v1 = vmul.f32 0.7978846, %v1784_v59  ;;  %v1786_v13 = vadd.f32 %v1782_v61, %v1769_v40 }
 0xe2c   : > { %2627 = vtanh.f32 %v1787_v50  ;;  %v1789_v2 = vmul.f32 0.7978846, %v1785_v0 }
 0xe2d   : > { %2629 = vtanh.f32 %v1788_v1  ;;  %v1790_v17 = vmul.f32 0.7978846, %v1786_v13 }
 0xe2e   : > { %2631 = vtanh.f32 %v1789_v2 }
 0xe2f   : > { %2633 = vtanh.f32 %v1790_v17 }
 0xe36   : > { %v2628_v3 = vpop.eup %2627 }
 0xe37   : > { %v2630_v4 = vpop.eup %2629  ;;  %v1795_v56 = vadd.f32 1.0, %v2628_v3 }
 0xe38   : > { %v2632_v5 = vpop.eup %2631  ;;  %v1796_v6 = vadd.f32 1.0, %v2630_v4 }
 0xe39   : > { %v2634_v7 = vpop.eup %2633  ;;  %v1799_v8 = vmul.f32 0.5, %v1795_v56  ;;  %v1797_v9 = vadd.f32 1.0, %v2632_v5 }
 0xe3a   : > { %v1798_v10 = vadd.f32 1.0, %v2634_v7  ;;  %v1800_v11 = vmul.f32 0.5, %v1796_v6 }
 0xe3b   : > { %v1801_v12 = vmul.f32 0.5, %v1797_v9  ;;  %v1803_v18 = vmul.f32 %v1799_v8, %v1763_v34 }
 0xe3c   : > { %v1802_v14 = vmul.f32 0.5, %v1798_v10  ;;  %v1804_v46 = vmul.f32 %v1800_v11, %v1765_v36 }
 0xe3d   : > { %v1805_v19 = vmul.f32 %v1801_v12, %v1767_v39 }
 0xe3e   : > { %v1806_v41 = vmul.f32 %v1802_v14, %v1769_v40 }
 0xe3f   : > { %v1807_v57 = vpack.c.bf16 %v1805_v19, %v1803_v18 }
 0xe40   : > { %v1808_v20 = vpack.c.bf16 %v1806_v41, %v1804_v46 }
 0xe42   : > { %1973 = vmatprep.mubr.bf16.mxu1 %v1808_v20 }
 0xe43   : > { %1974 = vmatmul.mubr.bf16.vlgmr.msra.gmra.mrb[28].mxu1 %v1807_v57 }
 0xf16   : > { %v2331_v21 = vpop.f32.mrb[28].mxu1 }
 0xf17   : > { %v2332_v24 = vpop.f32.mrb[29].mxu1 }
 0xf18   : > { %v2333_v25 = vadd.f32 %v2332_v24, %v2331_v21  ;;  %v2334_v26 = vpop.f32.mrb[30].mxu1 }
 0xf19   : > { %v2335_v28 = vpop.f32.mrb[31].mxu1 }
 0xf1a   : > { %v1976_v27 = vadd.f32 %v2333_v25, %v1844_v22  ;;  %v2336_v29 = vadd.f32 %v2335_v28, %v2334_v26 }
 0xf1c   : > { %v1979_v30 = vadd.f32 %v2336_v29, %v1844_v22  ;;  %v1982_v31 = vadd.f32 %v1976_v27, %v3308_v15 }
 0xf1e   : > { %1984 = vadd.xlane.f32.xlu1 %v1982_v31  ;;  %v1983_v63 = vadd.f32 %v1979_v30, %v3310_v16  ;;  %v2008_v16 = vsub.s32 4, %v3116_v48 }
 0xf20   : > { %1986 = vadd.xlane.f32.xlu0 %v1983_v63  ;;  %v2009_v47 = vrot.slane %v3281_v23, %v2008_v16 }
 0xfab   : > { %v1985_v62 = vpop.xlane.xlu1 %1984 }
 0xfac   : > { %v1988_v32 = vmul.f32 0.0078125, %v1985_v62 }
 0xfad   : > { %v1987_v33 = vpop.xlane.xlu0 %1986 }
 0xfae   : > { %v1990_v34 = vsub.f32 %v1982_v31, %v1988_v32  ;;  %v1989_v35 = vmul.f32 0.0078125, %v1987_v33 }
 0xfb0   : > { %v1991_v36 = vsub.f32 %v1983_v63, %v1989_v35  ;;  %v1992_v37 = vmul.f32 %v1990_v34, %v1990_v34 }
 0xfb2   : > { %1994 = vadd.xlane.f32.xlu0 %v1992_v37  ;;  %v1993_v38 = vmul.f32 %v1991_v36, %v1991_v36 }
 0xfb6   : > { %1996 = vadd.xlane.f32.xlu0 %v1993_v38 }
0x103f   : > { %v1995_v39 = vpop.xlane.xlu0 %1994 }
0x1040   : > { %v1998_v43 = vmul.f32 0.0078125, %v1995_v39 }
0x1042   : > { %v2000_v44 = vadd.f32 1e-12, %v1998_v43 }
0x1043   : > { %v1997_v40 = vpop.xlane.xlu0 %1996 }
0x1044   : > { %2635 = vrsqrt.f32 %v2000_v44  ;;  %v1999_v15 = vmul.f32 0.0078125, %v1997_v40 }
0x1046   : > { %v2001_v42 = vadd.f32 1e-12, %v1999_v15 }
0x1048   : > { %2637 = vrsqrt.f32 %v2001_v42 }
0x104e   : > { %v2636_v52 = vpop.eup %2635 }
0x104f   : > { %v2004_v54 = vmul.f32 %v2636_v52, %v1990_v34 }
0x1051   : > { %v2010_v55 = vmul.f32 %v2009_v47, %v2004_v54 }
0x1052   : > { %v2638_v49 = vpop.eup %2637 }
0x1053   : > { %v2016_v58 = vadd.f32 %v2015_v53, %v2010_v55  ;;  %v2005_v51 = vmul.f32 %v2638_v49, %v1991_v36  ;;  %2023 = sbr.rel (%p2270_p7) target bundleno = 4186 (0x105a), region = 80 }
0x1055   : > { %2018 = vst [vmem:[#allocation2] sm:$0xff] %v2016_v58  ;;  %v2011_v59 = vmul.f32 %v2009_v47, %v2005_v51  ;;  %2024 = vst [vmem:[#allocation9] sm:$0x1] (!%p2270_p7), %v2016_v58 }
0x1057   : > { %v2017_v61 = vadd.f32 %v2015_v53, %v2011_v59 }
0x1059   : > { %2019 = vst [vmem:[#allocation2 + $0x8] sm:$0xff] %v2017_v61  ;;  %2025 = vst [vmem:[#allocation9 + $0x1] sm:$0x1] (!%p2270_p7), %v2017_v61 }
0x105a PF: > { %p2462_p12 = scmp.eq.s32.totalorder %s2887_s17, 1  ;;  %s2812_s13 = smov [#allocation9]  }
0x105b   : > { %s2033_s27 = sshll.u32 %s2812_s13, 4  ;;  %s2034_s27 = int_to_ptr.vmem [resolvable:$true] %s2033_s27 }
0x105c   : > { %s2729_s11 = scalar_lea.vmem %s2034_s27, 32  ;;  %p2736_p6 = scmp.lt.s32.totalorder %s2034_s27, %s2034_s27 }
0x105d   : > { %p2730_p2 = scmp.ne.s32.totalorder %s2034_s27, %s2729_s11  ;;  %p2737_p1 = scmp.lt.s32.totalorder %s2729_s11, %s2729_s11 }
0x105f   : > { %p2731_p3 = pnand %p2730_p2, %p2462_p12  ;;  %p2738_p4 = por %p2737_p1, %p2736_p6 }
0x1061   : > { %p2732_p5 = pneg %p2731_p3 }
0x1063   : > { %p2739_p11 = pnand %p2738_p4, %p2732_p5 }
0x1065   : > { %2742 = shalt.err (!%p2739_p11)
}
0x1066   : > { %s2743_s23 = scalar_lea.hbm %s3388_s10, 32 }
0x1067   : > { %p2744_p13 = scmp.ne.s32.totalorder %s3388_s10, %s2743_s23  ;;  %p2749_p8 = scmp.lt.u32.totalorder %s2743_s23, %s3388_s10 }
0x1069   : > { %p2745_p10 = pnand %p2744_p13, %p2462_p12 }
0x106b   : > { %p2746_p9 = pneg %p2745_p10 }
0x106d   : > { %p2751_p0 = pnand %p2749_p8, %p2746_p9 }
0x106f   : > { %2754 = shalt.err (!%p2751_p0)
}
0x1070   : > { %2448 = dma.vmem_to_hbm [thread:$0]  (%p2462_p12), %s2034_s27, 32, %s3388_s10, [#allocation5]  }
0x1071   : > { %2780 = dma.done.wait (%p2462_p12), [#allocation5], 32  }
0x1072   : > { %2782 = vsyncadd (%p2462_p12), [#allocation5], 4294967264 }
0x1073 PF: > { %s3410_s16 = sld [smem:[#allocation14_spill]]  ;;  %s3411_s18 = sld [smem:[#allocation13_spill]] }
0x1074   : > { %s3412_s15 = sld [smem:[#allocation15_spill]]  ;;  %s3413_s13 = smov %s2789_s14 }
0x1079   : > { %p24_p7 = scmp.ge.s32.totalorder %s3410_s16, 4   ;;  %s3414_s14 = smov %s3411_s18 }
0x107b   :  { %26 = sbr.rel (!%p24_p7) target bundleno = 9 (0x9), region = 141 }
0x1082   :  { %2046 = vsyncpa [#allocation4], 1 }
0x1083   :  { %2048 = vsyncpa [#allocation4 + $0x1], 1 }
0x1084   :  { %2049 = vsyncpa [#allocation7], 1 }
0x1085   :  { %2051 = vsyncpa [#allocation7 + $0x1], 1 }
0x1086   :  { %2052 = vsyncpa [#allocation5], 1 }
0x1087   :  { %2054 = vsyncpa [#allocation5 + $0x1], 1 }

</bundles_post_ra>
